<compile_context>
chip_gen: v5e
topology: v5e:2x2
jax: 0.10.0
libtpu: 0.0.40
codegen_flags: <defaults>
</compile_context>

<pallas_src>
import functools

import numpy as np
import jax
import jax.numpy as jnp
from jax.experimental import pallas as pl
from jax.experimental.pallas import tpu as pltpu


def _layernorm(x, g, b, eps=1e-5):
    mu = jnp.mean(x, axis=-1, keepdims=True)
    var = jnp.mean(jnp.square(x - mu), axis=-1, keepdims=True)
    return (x - mu) * jax.lax.rsqrt(var + eps) * g + b


def encoder_layer_kernel(x_ref, mask_ref,
                         g1_ref, b1_ref,
                         wq_ref, bq_ref, wk_ref, bk_ref, wv_ref, bv_ref,
                         wo_ref, bo_ref,
                         g2_ref, b2_ref,
                         w1_ref, c1_ref, w2_ref, c2_ref,
                         out_ref,
                         attn_ref,
                         *, num_heads, d_k):
    nb, L, D = x_ref.shape
    x = x_ref[...].reshape(nb * L, D)                 # (M, D), M = nb*L, f32

    # ---- norm1 (f32 VPU/EUP path) ----
    x1 = _layernorm(x, g1_ref[...], b1_ref[...])      # f32
    x1_bf = x1.astype(jnp.bfloat16)

    # ---- Q/K/V projections: one (M, D)@(D, D) each, bf16 operands, f32 accum ----
    q = jnp.dot(x1_bf, wq_ref[...], preferred_element_type=jnp.float32) + bq_ref[...]
    k = jnp.dot(x1_bf, wk_ref[...], preferred_element_type=jnp.float32) + bk_ref[...]
    v = jnp.dot(x1_bf, wv_ref[...], preferred_element_type=jnp.float32) + bv_ref[...]

    # scale Q once instead of dividing every head's (L, L) score matrix
    q = q * float(1.0 / np.sqrt(d_k))

    q3 = q.reshape(nb, L, D).astype(jnp.bfloat16)
    k3 = k.reshape(nb, L, D).astype(jnp.bfloat16)
    v3 = v.reshape(nb, L, D).astype(jnp.bfloat16)

    # additive mask bias, computed once and shared by all heads (f32)
    bias = jnp.where(mask_ref[...] > 0.5, -10000.0, 0.0)   # (nb, L, L)

    # ---- per-head attention; each head writes its slice of the VMEM scratch ----
    for h in range(num_heads):                              # static unroll
        lo, hi = h * d_k, (h + 1) * d_k
        qh, kh, vh = q3[:, :, lo:hi], k3[:, :, lo:hi], v3[:, :, lo:hi]
        s = jnp.einsum('nqd,nkd->nqk', qh, kh,
                       preferred_element_type=jnp.float32) + bias
        m = jnp.max(s, axis=-1, keepdims=True)
        e = jnp.exp(s - m)                                  # f32 (EUP)
        p = e / jnp.sum(e, axis=-1, keepdims=True)          # exact f32 softmax
        attn_ref[:, :, lo:hi] = jnp.einsum(
            'nqk,nkd->nqd', p.astype(jnp.bfloat16), vh,
            preferred_element_type=jnp.float32)

    attn = attn_ref[...].reshape(nb * L, D).astype(jnp.bfloat16)
    mha = jnp.dot(attn, wo_ref[...], preferred_element_type=jnp.float32) + bo_ref[...]

    # residual 1 (PyTorch adds the *normalized* input: out = norm1(x) + MHA(norm1(x)))
    y = x1 + mha

    # ---- norm2 + position-wise FFN (1x1 convs == pointwise matmuls) ----
    y2 = _layernorm(y, g2_ref[...], b2_ref[...])
    hid = jnp.maximum(
        jnp.dot(y2.astype(jnp.bfloat16), w1_ref[...],
                preferred_element_type=jnp.float32) + c1_ref[...], 0.0)
    ffn = jnp.dot(hid.astype(jnp.bfloat16), w2_ref[...],
                  preferred_element_type=jnp.float32) + c2_ref[...]

    out_ref[...] = (y2 + ffn).reshape(nb, L, D).astype(out_ref.dtype)


def _pick_block_batch(n, l, target_rows=256):
    """Largest divisor of n with nb*l <= target_rows (at least 1)."""
    cap = max(1, min(n, target_rows // max(l, 1)))
    for nb in range(cap, 0, -1):
        if n % nb == 0:
            return nb
    return 1


def encoder_layer(x, mask, params, *, num_heads):
    N, L, D = x.shape
    assert D % num_heads == 0
    d_k = D // num_heads
    dff = params["w1"].shape[1]

    nb = _pick_block_batch(N, L)         # batch elements per grid step
    grid = (N // nb,)

    # bf16 matmul operands for the MXU; biases / LN params stay f32
    # (added after the f32 accumulation).
    wq = params["wq"].astype(jnp.bfloat16)
    wk = params["wk"].astype(jnp.bfloat16)
    wv = params["wv"].astype(jnp.bfloat16)
    wo = params["wo"].astype(jnp.bfloat16)
    w1 = params["w1"].astype(jnp.bfloat16)
    w2 = params["w2"].astype(jnp.bfloat16)
    mask_bf = mask.astype(jnp.bfloat16)  # halves the mask DMA bytes

    def full_spec(shape):
        return pl.BlockSpec(shape, lambda i, s=shape: (0,) * len(s))

    in_specs = [
        pl.BlockSpec((nb, L, D), lambda i: (i, 0, 0)),   # x
        pl.BlockSpec((nb, L, L), lambda i: (i, 0, 0)),   # attn_mask
        full_spec((1, D)), full_spec((1, D)),            # norm1 gamma/beta
        full_spec((D, D)), full_spec((1, D)),            # W_Q, b_Q
        full_spec((D, D)), full_spec((1, D)),            # W_K, b_K
        full_spec((D, D)), full_spec((1, D)),            # W_V, b_V
        full_spec((D, D)), full_spec((1, D)),            # W_out, b_out
        full_spec((1, D)), full_spec((1, D)),            # norm2 gamma/beta
        full_spec((D, dff)), full_spec((1, dff)),        # conv1 (pointwise matmul)
        full_spec((dff, D)), full_spec((1, D)),          # conv2 (pointwise matmul)
    ]

    kernel = functools.partial(encoder_layer_kernel, num_heads=num_heads, d_k=d_k)

    return pl.pallas_call(
        kernel,
        out_shape=jax.ShapeDtypeStruct((N, L, D), x.dtype),
        grid_spec=pltpu.PrefetchScalarGridSpec(
            num_scalar_prefetch=0,
            grid=grid,
            in_specs=in_specs,
            out_specs=pl.BlockSpec((nb, L, D), lambda i: (i, 0, 0)),
            scratch_shapes=[pltpu.VMEM((nb, L, D), jnp.float32)],  # per-head attn out
        ),
        compiler_params=pltpu.CompilerParams(
            dimension_semantics=("parallel",),        # batch steps independent -> megacore
            vmem_limit_bytes=32 * 1024 * 1024),
    )(x, mask_bf,
      params["g1"], params["b1"],
      wq, params["bq"], wk, params["bk"], wv, params["bv"],
      wo, params["bo"],
      params["g2"], params["b2"],
      w1, params["c1"], w2, params["c2"])


def reference(x, mask, params, *, num_heads, matmul_dtype=None):
    """Pure-JAX reference mirroring the PyTorch forward.
    matmul_dtype=None -> exact f32; jnp.bfloat16 -> mimics the kernel's mixed
    precision (bf16 matmul operands, f32 accumulation)."""
    N, L, D = x.shape
    d_k = D // num_heads
    cast = (lambda t: t) if matmul_dtype is None else (lambda t: t.astype(matmul_dtype))

    def ln(t, g, b):
        mu = t.mean(-1, keepdims=True)
        var = ((t - mu) ** 2).mean(-1, keepdims=True)
        return (t - mu) * jax.lax.rsqrt(var + 1e-5) * g + b

    def mm(a, b):
        return jnp.einsum("...ij,jk->...ik", cast(a), cast(b),
                          preferred_element_type=jnp.float32)

    x1 = ln(x, params["g1"], params["b1"])
    q = mm(x1, params["wq"]) + params["bq"]
    k = mm(x1, params["wk"]) + params["bk"]
    v = mm(x1, params["wv"]) + params["bv"]
    q = q * (1.0 / np.sqrt(d_k))           # same scaling point as the kernel
    qh = q.reshape(N, L, num_heads, d_k).transpose(0, 2, 1, 3)
    kh = k.reshape(N, L, num_heads, d_k).transpose(0, 2, 1, 3)
    vh = v.reshape(N, L, num_heads, d_k).transpose(0, 2, 1, 3)
    s = jnp.einsum("nhqd,nhkd->nhqk", cast(qh), cast(kh),
                   preferred_element_type=jnp.float32)
    s = jnp.where(mask[:, None, :, :] > 0.5, -10000.0, s)
    p = jax.nn.softmax(s, axis=-1)
    o = jnp.einsum("nhqk,nhkd->nhqd", cast(p), cast(vh),
                   preferred_element_type=jnp.float32)
    o = o.transpose(0, 2, 1, 3).reshape(N, L, D)
    mha = mm(o, params["wo"]) + params["bo"]
    y = x1 + mha
    y2 = ln(y, params["g2"], params["b2"])
    hid = jnp.maximum(mm(y2, params["w1"]) + params["c1"], 0.0)
    return y2 + mm(hid, params["w2"]) + params["c2"]


if __name__ == "__main__":
    N, L, D = 2, 8, 32      # batch, seq, dim
    num_heads = 4
    dff = 64
    d_k = D // num_heads

    key = jax.random.PRNGKey(0)
    ks = jax.random.split(key, 16)

    std_qk = float(np.sqrt(2.0 / (D + d_k)))
    std_v = float(np.sqrt(2.0 / (D + d_k)))   # d_v == d_k here

    params = {
        "g1": jnp.ones((1, D), jnp.float32),
        "b1": jnp.zeros((1, D), jnp.float32),
        "wq": std_qk * jax.random.normal(ks[0], (D, D), jnp.float32),
        "bq": 0.01 * jax.random.normal(ks[1], (1, D), jnp.float32),
        "wk": std_qk * jax.random.normal(ks[2], (D, D), jnp.float32),
        "bk": 0.01 * jax.random.normal(ks[3], (1, D), jnp.float32),
        "wv": std_v * jax.random.normal(ks[4], (D, D), jnp.float32),
        "bv": 0.01 * jax.random.normal(ks[5], (1, D), jnp.float32),
        "wo": std_v * jax.random.normal(ks[6], (D, D), jnp.float32),
        "bo": 0.01 * jax.random.normal(ks[7], (1, D), jnp.float32),
        "g2": jnp.ones((1, D), jnp.float32),
        "b2": jnp.zeros((1, D), jnp.float32),
        # conv1: Conv1d(D, dff, 1) weight (dff, D, 1) -> stored as (D, dff)
        "w1": (1.0 / np.sqrt(D)) * jax.random.normal(ks[8], (D, dff), jnp.float32),
        "c1": 0.01 * jax.random.normal(ks[9], (1, dff), jnp.float32),
        # conv2: Conv1d(dff, D, 1) weight (D, dff, 1) -> stored as (dff, D)
        "w2": (1.0 / np.sqrt(dff)) * jax.random.normal(ks[10], (fifteen := dff, D), jnp.float32),
        "c2": 0.01 * jax.random.normal(ks[11], (1, D), jnp.float32),
    }

    x = jax.random.normal(ks[12], (N, L, D), jnp.float32)
    # causal attention mask, 1.0 == masked, shape (N, q_len, k_len)
    causal = jnp.triu(jnp.ones((L, L), jnp.float32), k=1)
    mask = jnp.broadcast_to(causal, (N, L, L))

    out = encoder_layer(x, mask, params, num_heads=num_heads)
    out = jax.block_until_ready(out)

    # check against a reference that mirrors the kernel's mixed precision
    # (bf16 matmul operands, f32 accumulation) with realistic bf16 tolerances
    ref_bf16 = reference(x, mask, params, num_heads=num_heads,
                         matmul_dtype=jnp.bfloat16)
    np.testing.assert_allclose(np.asarray(out), np.asarray(ref_bf16),
                               rtol=2e-2, atol=2e-2)

    # sanity check against the exact f32 reference (allows bf16 quantization)
    ref_f32 = reference(x, mask, params, num_heads=num_heads)
    np.testing.assert_allclose(np.asarray(out), np.asarray(ref_f32),
                               rtol=5e-2, atol=5e-2)

    print("KERNEL_OK")
</pallas_src>

<mosaic_0001>
module attributes {stable_mosaic.version = 11 : i64} {
  func.func @encoder_layer_kernel(%arg0: i32, %arg1: memref<2x8x32xf32, #tpu.memory_space<vmem>>, %arg2: memref<2x8x8xbf16, #tpu.memory_space<vmem>>, %arg3: memref<1x32xf32, #tpu.memory_space<vmem>>, %arg4: memref<1x32xf32, #tpu.memory_space<vmem>>, %arg5: memref<32x32xbf16, #tpu.memory_space<vmem>>, %arg6: memref<1x32xf32, #tpu.memory_space<vmem>>, %arg7: memref<32x32xbf16, #tpu.memory_space<vmem>>, %arg8: memref<1x32xf32, #tpu.memory_space<vmem>>, %arg9: memref<32x32xbf16, #tpu.memory_space<vmem>>, %arg10: memref<1x32xf32, #tpu.memory_space<vmem>>, %arg11: memref<32x32xbf16, #tpu.memory_space<vmem>>, %arg12: memref<1x32xf32, #tpu.memory_space<vmem>>, %arg13: memref<1x32xf32, #tpu.memory_space<vmem>>, %arg14: memref<1x32xf32, #tpu.memory_space<vmem>>, %arg15: memref<32x64xbf16, #tpu.memory_space<vmem>>, %arg16: memref<1x64xf32, #tpu.memory_space<vmem>>, %arg17: memref<64x32xbf16, #tpu.memory_space<vmem>>, %arg18: memref<1x32xf32, #tpu.memory_space<vmem>>, %arg19: memref<2x8x32xf32, #tpu.memory_space<vmem>>, %arg20: memref<2x8x32xf32, #tpu.memory_space<vmem>>) attributes {dimension_semantics = [#tpu.dimension_semantics<parallel>], iteration_bounds = array<i64: 1>, scalar_prefetch = 0 : i64, scratch_operands = 1 : i64, tpu.core_type = #tpu.core_type<tc>, window_params = [{transform_indices = @transform_0, window_bounds = array<i64: 2, 8, 32>}, {transform_indices = @transform_1, window_bounds = array<i64: 2, 8, 8>}, {pipeline_mode = #tpu.pipeline_mode<synchronous>, transform_indices = @transform_2, window_bounds = array<i64: 1, 32>}, {pipeline_mode = #tpu.pipeline_mode<synchronous>, transform_indices = @transform_3, window_bounds = array<i64: 1, 32>}, {pipeline_mode = #tpu.pipeline_mode<synchronous>, transform_indices = @transform_4, window_bounds = array<i64: 32, 32>}, {pipeline_mode = #tpu.pipeline_mode<synchronous>, transform_indices = @transform_5, window_bounds = array<i64: 1, 32>}, {pipeline_mode = #tpu.pipeline_mode<synchronous>, transform_indices = @transform_6, window_bounds = array<i64: 32, 32>}, {pipeline_mode = #tpu.pipeline_mode<synchronous>, transform_indices = @transform_7, window_bounds = array<i64: 1, 32>}, {pipeline_mode = #tpu.pipeline_mode<synchronous>, transform_indices = @transform_8, window_bounds = array<i64: 32, 32>}, {pipeline_mode = #tpu.pipeline_mode<synchronous>, transform_indices = @transform_9, window_bounds = array<i64: 1, 32>}, {pipeline_mode = #tpu.pipeline_mode<synchronous>, transform_indices = @transform_10, window_bounds = array<i64: 32, 32>}, {pipeline_mode = #tpu.pipeline_mode<synchronous>, transform_indices = @transform_11, window_bounds = array<i64: 1, 32>}, {pipeline_mode = #tpu.pipeline_mode<synchronous>, transform_indices = @transform_12, window_bounds = array<i64: 1, 32>}, {pipeline_mode = #tpu.pipeline_mode<synchronous>, transform_indices = @transform_13, window_bounds = array<i64: 1, 32>}, {pipeline_mode = #tpu.pipeline_mode<synchronous>, transform_indices = @transform_14, window_bounds = array<i64: 32, 64>}, {pipeline_mode = #tpu.pipeline_mode<synchronous>, transform_indices = @transform_15, window_bounds = array<i64: 1, 64>}, {pipeline_mode = #tpu.pipeline_mode<synchronous>, transform_indices = @transform_16, window_bounds = array<i64: 64, 32>}, {pipeline_mode = #tpu.pipeline_mode<synchronous>, transform_indices = @transform_17, window_bounds = array<i64: 1, 32>}, {transform_indices = @transform_18, window_bounds = array<i64: 2, 8, 32>}]} {
    %c0 = arith.constant 0 : index
    %c0_0 = arith.constant 0 : index
    %c0_1 = arith.constant 0 : index
    %0 = vector.load %arg1[%c0, %c0_0, %c0_1] : memref<2x8x32xf32, #tpu.memory_space<vmem>>, vector<2x8x32xf32>
    %1 = vector.shape_cast %0 : vector<2x8x32xf32> to vector<16x32xf32>
    %c0_2 = arith.constant 0 : index
    %c0_3 = arith.constant 0 : index
    %2 = vector.load %arg3[%c0_2, %c0_3] : memref<1x32xf32, #tpu.memory_space<vmem>>, vector<1x32xf32>
    %c0_4 = arith.constant 0 : index
    %c0_5 = arith.constant 0 : index
    %3 = vector.load %arg4[%c0_4, %c0_5] : memref<1x32xf32, #tpu.memory_space<vmem>>, vector<1x32xf32>
    %cst = arith.constant dense<0.000000e+00> : vector<16xf32>
    %4 = vector.multi_reduction <add>, %1, %cst [1] : vector<16x32xf32> to vector<16xf32>
    %5 = vector.shape_cast %4 : vector<16xf32> to vector<16x1xf32>
    %cst_6 = arith.constant 3.200000e+01 : f32
    %6 = vector.broadcast %cst_6 : f32 to vector<16x1xf32>
    %7 = arith.divf %5, %6 : vector<16x1xf32>
    %8 = vector.broadcast %7 : vector<16x1xf32> to vector<16x32xf32>
    %9 = arith.subf %1, %8 : vector<16x32xf32>
    %10 = arith.mulf %9, %9 : vector<16x32xf32>
    %cst_7 = arith.constant dense<0.000000e+00> : vector<16xf32>
    %11 = vector.multi_reduction <add>, %10, %cst_7 [1] : vector<16x32xf32> to vector<16xf32>
    %12 = vector.shape_cast %11 : vector<16xf32> to vector<16x1xf32>
    %cst_8 = arith.constant 3.200000e+01 : f32
    %13 = vector.broadcast %cst_8 : f32 to vector<16x1xf32>
    %14 = arith.divf %12, %13 : vector<16x1xf32>
    %15 = vector.broadcast %7 : vector<16x1xf32> to vector<16x32xf32>
    %16 = arith.subf %1, %15 : vector<16x32xf32>
    %cst_9 = arith.constant 9.99999974E-6 : f32
    %17 = vector.broadcast %cst_9 : f32 to vector<16x1xf32>
    %18 = arith.addf %14, %17 : vector<16x1xf32>
    %19 = math.rsqrt %18 : vector<16x1xf32>
    %20 = vector.broadcast %19 : vector<16x1xf32> to vector<16x32xf32>
    %21 = arith.mulf %16, %20 : vector<16x32xf32>
    %22 = vector.broadcast %2 : vector<1x32xf32> to vector<16x32xf32>
    %23 = arith.mulf %21, %22 : vector<16x32xf32>
    %24 = vector.broadcast %3 : vector<1x32xf32> to vector<16x32xf32>
    %25 = arith.addf %23, %24 : vector<16x32xf32>
    %26 = arith.truncf %25 : vector<16x32xf32> to vector<16x32xbf16>
    %c0_10 = arith.constant 0 : index
    %c0_11 = arith.constant 0 : index
    %27 = vector.load %arg5[%c0_10, %c0_11] : memref<32x32xbf16, #tpu.memory_space<vmem>>, vector<32x32xbf16>
    %cst_12 = arith.constant dense<0.000000e+00> : vector<16x32xf32>
    %28 = tpu.matmul %26, %27, %cst_12 {dimension_numbers = #tpu.dot_dimension_numbers<[1], [0], [0], [1], [0, 0, 1, 1], [], []>} : vector<16x32xbf16>, vector<32x32xbf16>, vector<16x32xf32> -> vector<16x32xf32>
    %c0_13 = arith.constant 0 : index
    %c0_14 = arith.constant 0 : index
    %29 = vector.load %arg6[%c0_13, %c0_14] : memref<1x32xf32, #tpu.memory_space<vmem>>, vector<1x32xf32>
    %30 = vector.broadcast %29 : vector<1x32xf32> to vector<16x32xf32>
    %31 = arith.addf %28, %30 : vector<16x32xf32>
    %c0_15 = arith.constant 0 : index
    %c0_16 = arith.constant 0 : index
    %32 = vector.load %arg7[%c0_15, %c0_16] : memref<32x32xbf16, #tpu.memory_space<vmem>>, vector<32x32xbf16>
    %cst_17 = arith.constant dense<0.000000e+00> : vector<16x32xf32>
    %33 = tpu.matmul %26, %32, %cst_17 {dimension_numbers = #tpu.dot_dimension_numbers<[1], [0], [0], [1], [0, 0, 1, 1], [], []>} : vector<16x32xbf16>, vector<32x32xbf16>, vector<16x32xf32> -> vector<16x32xf32>
    %c0_18 = arith.constant 0 : index
    %c0_19 = arith.constant 0 : index
    %34 = vector.load %arg8[%c0_18, %c0_19] : memref<1x32xf32, #tpu.memory_space<vmem>>, vector<1x32xf32>
    %35 = vector.broadcast %34 : vector<1x32xf32> to vector<16x32xf32>
    %36 = arith.addf %33, %35 : vector<16x32xf32>
    %c0_20 = arith.constant 0 : index
    %c0_21 = arith.constant 0 : index
    %37 = vector.load %arg9[%c0_20, %c0_21] : memref<32x32xbf16, #tpu.memory_space<vmem>>, vector<32x32xbf16>
    %cst_22 = arith.constant dense<0.000000e+00> : vector<16x32xf32>
    %38 = tpu.matmul %26, %37, %cst_22 {dimension_numbers = #tpu.dot_dimension_numbers<[1], [0], [0], [1], [0, 0, 1, 1], [], []>} : vector<16x32xbf16>, vector<32x32xbf16>, vector<16x32xf32> -> vector<16x32xf32>
    %c0_23 = arith.constant 0 : index
    %c0_24 = arith.constant 0 : index
    %39 = vector.load %arg10[%c0_23, %c0_24] : memref<1x32xf32, #tpu.memory_space<vmem>>, vector<1x32xf32>
    %40 = vector.broadcast %39 : vector<1x32xf32> to vector<16x32xf32>
    %41 = arith.addf %38, %40 : vector<16x32xf32>
    %cst_25 = arith.constant 0.353553385 : f32
    %42 = vector.broadcast %cst_25 : f32 to vector<16x32xf32>
    %43 = arith.mulf %31, %42 : vector<16x32xf32>
    %44 = vector.shape_cast %43 : vector<16x32xf32> to vector<2x8x32xf32>
    %45 = arith.truncf %44 : vector<2x8x32xf32> to vector<2x8x32xbf16>
    %46 = vector.shape_cast %36 : vector<16x32xf32> to vector<2x8x32xf32>
    %47 = arith.truncf %46 : vector<2x8x32xf32> to vector<2x8x32xbf16>
    %48 = vector.shape_cast %41 : vector<16x32xf32> to vector<2x8x32xf32>
    %49 = arith.truncf %48 : vector<2x8x32xf32> to vector<2x8x32xbf16>
    %c0_26 = arith.constant 0 : index
    %c0_27 = arith.constant 0 : index
    %c0_28 = arith.constant 0 : index
    %50 = vector.load %arg2[%c0_26, %c0_27, %c0_28] : memref<2x8x8xbf16, #tpu.memory_space<vmem>>, vector<2x8x8xbf16>
    %cst_29 = arith.constant 5.000000e-01 : bf16
    %51 = vector.broadcast %cst_29 : bf16 to vector<2x8x8xbf16>
    %52 = arith.cmpf ogt, %50, %51 : vector<2x8x8xbf16>
    %cst_30 = arith.constant -1.000000e+04 : f32
    %cst_31 = arith.constant 0.000000e+00 : f32
    %53 = vector.broadcast %cst_30 : f32 to vector<2x8x8xf32>
    %54 = vector.broadcast %cst_31 : f32 to vector<2x8x8xf32>
    %55 = arith.select %52, %53, %54 : vector<2x8x8xi1>, vector<2x8x8xf32>
    %56 = vector.extract_strided_slice %45 {offsets = [0, 0, 0], sizes = [2, 8, 8], strides = [1, 1, 1]} : vector<2x8x32xbf16> to vector<2x8x8xbf16>
    %57 = vector.extract_strided_slice %47 {offsets = [0, 0, 0], sizes = [2, 8, 8], strides = [1, 1, 1]} : vector<2x8x32xbf16> to vector<2x8x8xbf16>
    %58 = vector.extract_strided_slice %49 {offsets = [0, 0, 0], sizes = [2, 8, 8], strides = [1, 1, 1]} : vector<2x8x32xbf16> to vector<2x8x8xbf16>
    "tpu.trace_start"() <{level = 10 : i32, message = "nqd,nkd->nqk"}> : () -> ()
    %cst_32 = arith.constant dense<0.000000e+00> : vector<2x8x8xf32>
    %59 = tpu.matmul %56, %57, %cst_32 {dimension_numbers = #tpu.dot_dimension_numbers<[2], [2], [1], [1], [0, 0, 0, 1, 1, 1], [0], [0]>} : vector<2x8x8xbf16>, vector<2x8x8xbf16>, vector<2x8x8xf32> -> vector<2x8x8xf32>
    "tpu.trace_stop"() : () -> ()
    %60 = arith.addf %59, %55 : vector<2x8x8xf32>
    %cst_33 = arith.constant dense<0xFF800000> : vector<2x8xf32>
    %61 = vector.multi_reduction <maximumf>, %60, %cst_33 [2] : vector<2x8x8xf32> to vector<2x8xf32>
    %62 = vector.shape_cast %61 : vector<2x8xf32> to vector<2x8x1xf32>
    %63 = vector.broadcast %62 : vector<2x8x1xf32> to vector<2x8x8xf32>
    %64 = arith.subf %60, %63 : vector<2x8x8xf32>
    %65 = math.exp %64 : vector<2x8x8xf32>
    %cst_34 = arith.constant dense<0.000000e+00> : vector<2x8xf32>
    %66 = vector.multi_reduction <add>, %65, %cst_34 [2] : vector<2x8x8xf32> to vector<2x8xf32>
    %67 = vector.shape_cast %66 : vector<2x8xf32> to vector<2x8x1xf32>
    %68 = vector.broadcast %67 : vector<2x8x1xf32> to vector<2x8x8xf32>
    %69 = arith.divf %65, %68 : vector<2x8x8xf32>
    %70 = arith.truncf %69 : vector<2x8x8xf32> to vector<2x8x8xbf16>
    "tpu.trace_start"() <{level = 10 : i32, message = "nqk,nkd->nqd"}> : () -> ()
    %cst_35 = arith.constant dense<0.000000e+00> : vector<2x8x8xf32>
    %71 = tpu.matmul %70, %58, %cst_35 {dimension_numbers = #tpu.dot_dimension_numbers<[2], [1], [1], [2], [0, 0, 0, 1, 1, 2], [0], [0]>} : vector<2x8x8xbf16>, vector<2x8x8xbf16>, vector<2x8x8xf32> -> vector<2x8x8xf32>
    "tpu.trace_stop"() : () -> ()
    %c0_36 = arith.constant 0 : index
    %c0_37 = arith.constant 0 : index
    %c0_38 = arith.constant 0 : index
    %72 = vector.load %arg20[%c0_36, %c0_37, %c0_38] : memref<2x8x32xf32, #tpu.memory_space<vmem>>, vector<2x8x8xf32>
    tpu.vector_store %arg20[%c0_36, %c0_37, %c0_38], %71 {strides = array<i32>} : memref<2x8x32xf32, #tpu.memory_space<vmem>>, vector<2x8x8xf32>,
    %73 = vector.extract_strided_slice %45 {offsets = [0, 0, 8], sizes = [2, 8, 8], strides = [1, 1, 1]} : vector<2x8x32xbf16> to vector<2x8x8xbf16>
    %74 = vector.extract_strided_slice %47 {offsets = [0, 0, 8], sizes = [2, 8, 8], strides = [1, 1, 1]} : vector<2x8x32xbf16> to vector<2x8x8xbf16>
    %75 = vector.extract_strided_slice %49 {offsets = [0, 0, 8], sizes = [2, 8, 8], strides = [1, 1, 1]} : vector<2x8x32xbf16> to vector<2x8x8xbf16>
    "tpu.trace_start"() <{level = 10 : i32, message = "nqd,nkd->nqk"}> : () -> ()
    %cst_39 = arith.constant dense<0.000000e+00> : vector<2x8x8xf32>
    %76 = tpu.matmul %73, %74, %cst_39 {dimension_numbers = #tpu.dot_dimension_numbers<[2], [2], [1], [1], [0, 0, 0, 1, 1, 1], [0], [0]>} : vector<2x8x8xbf16>, vector<2x8x8xbf16>, vector<2x8x8xf32> -> vector<2x8x8xf32>
    "tpu.trace_stop"() : () -> ()
    %77 = arith.addf %76, %55 : vector<2x8x8xf32>
    %cst_40 = arith.constant dense<0xFF800000> : vector<2x8xf32>
    %78 = vector.multi_reduction <maximumf>, %77, %cst_40 [2] : vector<2x8x8xf32> to vector<2x8xf32>
    %79 = vector.shape_cast %78 : vector<2x8xf32> to vector<2x8x1xf32>
    %80 = vector.broadcast %79 : vector<2x8x1xf32> to vector<2x8x8xf32>
    %81 = arith.subf %77, %80 : vector<2x8x8xf32>
    %82 = math.exp %81 : vector<2x8x8xf32>
    %cst_41 = arith.constant dense<0.000000e+00> : vector<2x8xf32>
    %83 = vector.multi_reduction <add>, %82, %cst_41 [2] : vector<2x8x8xf32> to vector<2x8xf32>
    %84 = vector.shape_cast %83 : vector<2x8xf32> to vector<2x8x1xf32>
    %85 = vector.broadcast %84 : vector<2x8x1xf32> to vector<2x8x8xf32>
    %86 = arith.divf %82, %85 : vector<2x8x8xf32>
    %87 = arith.truncf %86 : vector<2x8x8xf32> to vector<2x8x8xbf16>
    "tpu.trace_start"() <{level = 10 : i32, message = "nqk,nkd->nqd"}> : () -> ()
    %cst_42 = arith.constant dense<0.000000e+00> : vector<2x8x8xf32>
    %88 = tpu.matmul %87, %75, %cst_42 {dimension_numbers = #tpu.dot_dimension_numbers<[2], [1], [1], [2], [0, 0, 0, 1, 1, 2], [0], [0]>} : vector<2x8x8xbf16>, vector<2x8x8xbf16>, vector<2x8x8xf32> -> vector<2x8x8xf32>
    "tpu.trace_stop"() : () -> ()
    %c0_43 = arith.constant 0 : index
    %c0_44 = arith.constant 0 : index
    %c8 = arith.constant 8 : index
    %89 = vector.load %arg20[%c0_43, %c0_44, %c8] : memref<2x8x32xf32, #tpu.memory_space<vmem>>, vector<2x8x8xf32>
    tpu.vector_store %arg20[%c0_43, %c0_44, %c8], %88 {strides = array<i32>} : memref<2x8x32xf32, #tpu.memory_space<vmem>>, vector<2x8x8xf32>,
    %90 = vector.extract_strided_slice %45 {offsets = [0, 0, 16], sizes = [2, 8, 8], strides = [1, 1, 1]} : vector<2x8x32xbf16> to vector<2x8x8xbf16>
    %91 = vector.extract_strided_slice %47 {offsets = [0, 0, 16], sizes = [2, 8, 8], strides = [1, 1, 1]} : vector<2x8x32xbf16> to vector<2x8x8xbf16>
    %92 = vector.extract_strided_slice %49 {offsets = [0, 0, 16], sizes = [2, 8, 8], strides = [1, 1, 1]} : vector<2x8x32xbf16> to vector<2x8x8xbf16>
    "tpu.trace_start"() <{level = 10 : i32, message = "nqd,nkd->nqk"}> : () -> ()
    %cst_45 = arith.constant dense<0.000000e+00> : vector<2x8x8xf32>
    %93 = tpu.matmul %90, %91, %cst_45 {dimension_numbers = #tpu.dot_dimension_numbers<[2], [2], [1], [1], [0, 0, 0, 1, 1, 1], [0], [0]>} : vector<2x8x8xbf16>, vector<2x8x8xbf16>, vector<2x8x8xf32> -> vector<2x8x8xf32>
    "tpu.trace_stop"() : () -> ()
    %94 = arith.addf %93, %55 : vector<2x8x8xf32>
    %cst_46 = arith.constant dense<0xFF800000> : vector<2x8xf32>
    %95 = vector.multi_reduction <maximumf>, %94, %cst_46 [2] : vector<2x8x8xf32> to vector<2x8xf32>
    %96 = vector.shape_cast %95 : vector<2x8xf32> to vector<2x8x1xf32>
    %97 = vector.broadcast %96 : vector<2x8x1xf32> to vector<2x8x8xf32>
    %98 = arith.subf %94, %97 : vector<2x8x8xf32>
    %99 = math.exp %98 : vector<2x8x8xf32>
    %cst_47 = arith.constant dense<0.000000e+00> : vector<2x8xf32>
    %100 = vector.multi_reduction <add>, %99, %cst_47 [2] : vector<2x8x8xf32> to vector<2x8xf32>
    %101 = vector.shape_cast %100 : vector<2x8xf32> to vector<2x8x1xf32>
    %102 = vector.broadcast %101 : vector<2x8x1xf32> to vector<2x8x8xf32>
    %103 = arith.divf %99, %102 : vector<2x8x8xf32>
    %104 = arith.truncf %103 : vector<2x8x8xf32> to vector<2x8x8xbf16>
    "tpu.trace_start"() <{level = 10 : i32, message = "nqk,nkd->nqd"}> : () -> ()
    %cst_48 = arith.constant dense<0.000000e+00> : vector<2x8x8xf32>
    %105 = tpu.matmul %104, %92, %cst_48 {dimension_numbers = #tpu.dot_dimension_numbers<[2], [1], [1], [2], [0, 0, 0, 1, 1, 2], [0], [0]>} : vector<2x8x8xbf16>, vector<2x8x8xbf16>, vector<2x8x8xf32> -> vector<2x8x8xf32>
    "tpu.trace_stop"() : () -> ()
    %c0_49 = arith.constant 0 : index
    %c0_50 = arith.constant 0 : index
    %c16 = arith.constant 16 : index
    %106 = vector.load %arg20[%c0_49, %c0_50, %c16] : memref<2x8x32xf32, #tpu.memory_space<vmem>>, vector<2x8x8xf32>
    tpu.vector_store %arg20[%c0_49, %c0_50, %c16], %105 {strides = array<i32>} : memref<2x8x32xf32, #tpu.memory_space<vmem>>, vector<2x8x8xf32>,
    %107 = vector.extract_strided_slice %45 {offsets = [0, 0, 24], sizes = [2, 8, 8], strides = [1, 1, 1]} : vector<2x8x32xbf16> to vector<2x8x8xbf16>
    %108 = vector.extract_strided_slice %47 {offsets = [0, 0, 24], sizes = [2, 8, 8], strides = [1, 1, 1]} : vector<2x8x32xbf16> to vector<2x8x8xbf16>
    %109 = vector.extract_strided_slice %49 {offsets = [0, 0, 24], sizes = [2, 8, 8], strides = [1, 1, 1]} : vector<2x8x32xbf16> to vector<2x8x8xbf16>
    "tpu.trace_start"() <{level = 10 : i32, message = "nqd,nkd->nqk"}> : () -> ()
    %cst_51 = arith.constant dense<0.000000e+00> : vector<2x8x8xf32>
    %110 = tpu.matmul %107, %108, %cst_51 {dimension_numbers = #tpu.dot_dimension_numbers<[2], [2], [1], [1], [0, 0, 0, 1, 1, 1], [0], [0]>} : vector<2x8x8xbf16>, vector<2x8x8xbf16>, vector<2x8x8xf32> -> vector<2x8x8xf32>
    "tpu.trace_stop"() : () -> ()
    %111 = arith.addf %110, %55 : vector<2x8x8xf32>
    %cst_52 = arith.constant dense<0xFF800000> : vector<2x8xf32>
    %112 = vector.multi_reduction <maximumf>, %111, %cst_52 [2] : vector<2x8x8xf32> to vector<2x8xf32>
    %113 = vector.shape_cast %112 : vector<2x8xf32> to vector<2x8x1xf32>
    %114 = vector.broadcast %113 : vector<2x8x1xf32> to vector<2x8x8xf32>
    %115 = arith.subf %111, %114 : vector<2x8x8xf32>
    %116 = math.exp %115 : vector<2x8x8xf32>
    %cst_53 = arith.constant dense<0.000000e+00> : vector<2x8xf32>
    %117 = vector.multi_reduction <add>, %116, %cst_53 [2] : vector<2x8x8xf32> to vector<2x8xf32>
    %118 = vector.shape_cast %117 : vector<2x8xf32> to vector<2x8x1xf32>
    %119 = vector.broadcast %118 : vector<2x8x1xf32> to vector<2x8x8xf32>
    %120 = arith.divf %116, %119 : vector<2x8x8xf32>
    %121 = arith.truncf %120 : vector<2x8x8xf32> to vector<2x8x8xbf16>
    "tpu.trace_start"() <{level = 10 : i32, message = "nqk,nkd->nqd"}> : () -> ()
    %cst_54 = arith.constant dense<0.000000e+00> : vector<2x8x8xf32>
    %122 = tpu.matmul %121, %109, %cst_54 {dimension_numbers = #tpu.dot_dimension_numbers<[2], [1], [1], [2], [0, 0, 0, 1, 1, 2], [0], [0]>} : vector<2x8x8xbf16>, vector<2x8x8xbf16>, vector<2x8x8xf32> -> vector<2x8x8xf32>
    "tpu.trace_stop"() : () -> ()
    %c0_55 = arith.constant 0 : index
    %c0_56 = arith.constant 0 : index
    %c24 = arith.constant 24 : index
    %123 = vector.load %arg20[%c0_55, %c0_56, %c24] : memref<2x8x32xf32, #tpu.memory_space<vmem>>, vector<2x8x8xf32>
    tpu.vector_store %arg20[%c0_55, %c0_56, %c24], %122 {strides = array<i32>} : memref<2x8x32xf32, #tpu.memory_space<vmem>>, vector<2x8x8xf32>,
    %c0_57 = arith.constant 0 : index
    %c0_58 = arith.constant 0 : index
    %c0_59 = arith.constant 0 : index
    %124 = vector.load %arg20[%c0_57, %c0_58, %c0_59] : memref<2x8x32xf32, #tpu.memory_space<vmem>>, vector<2x8x32xf32>
    %125 = vector.shape_cast %124 : vector<2x8x32xf32> to vector<16x32xf32>
    %126 = arith.truncf %125 : vector<16x32xf32> to vector<16x32xbf16>
    %c0_60 = arith.constant 0 : index
    %c0_61 = arith.constant 0 : index
    %127 = vector.load %arg11[%c0_60, %c0_61] : memref<32x32xbf16, #tpu.memory_space<vmem>>, vector<32x32xbf16>
    %cst_62 = arith.constant dense<0.000000e+00> : vector<16x32xf32>
    %128 = tpu.matmul %126, %127, %cst_62 {dimension_numbers = #tpu.dot_dimension_numbers<[1], [0], [0], [1], [0, 0, 1, 1], [], []>} : vector<16x32xbf16>, vector<32x32xbf16>, vector<16x32xf32> -> vector<16x32xf32>
    %c0_63 = arith.constant 0 : index
    %c0_64 = arith.constant 0 : index
    %129 = vector.load %arg12[%c0_63, %c0_64] : memref<1x32xf32, #tpu.memory_space<vmem>>, vector<1x32xf32>
    %130 = vector.broadcast %129 : vector<1x32xf32> to vector<16x32xf32>
    %131 = arith.addf %128, %130 : vector<16x32xf32>
    %132 = arith.addf %25, %131 : vector<16x32xf32>
    %c0_65 = arith.constant 0 : index
    %c0_66 = arith.constant 0 : index
    %133 = vector.load %arg13[%c0_65, %c0_66] : memref<1x32xf32, #tpu.memory_space<vmem>>, vector<1x32xf32>
    %c0_67 = arith.constant 0 : index
    %c0_68 = arith.constant 0 : index
    %134 = vector.load %arg14[%c0_67, %c0_68] : memref<1x32xf32, #tpu.memory_space<vmem>>, vector<1x32xf32>
    %cst_69 = arith.constant dense<0.000000e+00> : vector<16xf32>
    %135 = vector.multi_reduction <add>, %132, %cst_69 [1] : vector<16x32xf32> to vector<16xf32>
    %136 = vector.shape_cast %135 : vector<16xf32> to vector<16x1xf32>
    %cst_70 = arith.constant 3.200000e+01 : f32
    %137 = vector.broadcast %cst_70 : f32 to vector<16x1xf32>
    %138 = arith.divf %136, %137 : vector<16x1xf32>
    %139 = vector.broadcast %138 : vector<16x1xf32> to vector<16x32xf32>
    %140 = arith.subf %132, %139 : vector<16x32xf32>
    %141 = arith.mulf %140, %140 : vector<16x32xf32>
    %cst_71 = arith.constant dense<0.000000e+00> : vector<16xf32>
    %142 = vector.multi_reduction <add>, %141, %cst_71 [1] : vector<16x32xf32> to vector<16xf32>
    %143 = vector.shape_cast %142 : vector<16xf32> to vector<16x1xf32>
    %cst_72 = arith.constant 3.200000e+01 : f32
    %144 = vector.broadcast %cst_72 : f32 to vector<16x1xf32>
    %145 = arith.divf %143, %144 : vector<16x1xf32>
    %146 = vector.broadcast %138 : vector<16x1xf32> to vector<16x32xf32>
    %147 = arith.subf %132, %146 : vector<16x32xf32>
    %cst_73 = arith.constant 9.99999974E-6 : f32
    %148 = vector.broadcast %cst_73 : f32 to vector<16x1xf32>
    %149 = arith.addf %145, %148 : vector<16x1xf32>
    %150 = math.rsqrt %149 : vector<16x1xf32>
    %151 = vector.broadcast %150 : vector<16x1xf32> to vector<16x32xf32>
    %152 = arith.mulf %147, %151 : vector<16x32xf32>
    %153 = vector.broadcast %133 : vector<1x32xf32> to vector<16x32xf32>
    %154 = arith.mulf %152, %153 : vector<16x32xf32>
    %155 = vector.broadcast %134 : vector<1x32xf32> to vector<16x32xf32>
    %156 = arith.addf %154, %155 : vector<16x32xf32>
    %157 = arith.truncf %156 : vector<16x32xf32> to vector<16x32xbf16>
    %c0_74 = arith.constant 0 : index
    %c0_75 = arith.constant 0 : index
    %158 = vector.load %arg15[%c0_74, %c0_75] : memref<32x64xbf16, #tpu.memory_space<vmem>>, vector<32x64xbf16>
    %cst_76 = arith.constant dense<0.000000e+00> : vector<16x64xf32>
    %159 = tpu.matmul %157, %158, %cst_76 {dimension_numbers = #tpu.dot_dimension_numbers<[1], [0], [0], [1], [0, 0, 1, 1], [], []>} : vector<16x32xbf16>, vector<32x64xbf16>, vector<16x64xf32> -> vector<16x64xf32>
    %c0_77 = arith.constant 0 : index
    %c0_78 = arith.constant 0 : index
    %160 = vector.load %arg16[%c0_77, %c0_78] : memref<1x64xf32, #tpu.memory_space<vmem>>, vector<1x64xf32>
    %161 = vector.broadcast %160 : vector<1x64xf32> to vector<16x64xf32>
    %162 = arith.addf %159, %161 : vector<16x64xf32>
    %cst_79 = arith.constant 0.000000e+00 : f32
    %163 = vector.broadcast %cst_79 : f32 to vector<16x64xf32>
    %164 = arith.maximumf %162, %163 : vector<16x64xf32>
    %165 = arith.truncf %164 : vector<16x64xf32> to vector<16x64xbf16>
    %c0_80 = arith.constant 0 : index
    %c0_81 = arith.constant 0 : index
    %166 = vector.load %arg17[%c0_80, %c0_81] : memref<64x32xbf16, #tpu.memory_space<vmem>>, vector<64x32xbf16>
    %cst_82 = arith.constant dense<0.000000e+00> : vector<16x32xf32>
    %167 = tpu.matmul %165, %166, %cst_82 {dimension_numbers = #tpu.dot_dimension_numbers<[1], [0], [0], [1], [0, 0, 1, 1], [], []>} : vector<16x64xbf16>, vector<64x32xbf16>, vector<16x32xf32> -> vector<16x32xf32>
    %c0_83 = arith.constant 0 : index
    %c0_84 = arith.constant 0 : index
    %168 = vector.load %arg18[%c0_83, %c0_84] : memref<1x32xf32, #tpu.memory_space<vmem>>, vector<1x32xf32>
    %169 = vector.broadcast %168 : vector<1x32xf32> to vector<16x32xf32>
    %170 = arith.addf %167, %169 : vector<16x32xf32>
    %171 = arith.addf %156, %170 : vector<16x32xf32>
    %172 = vector.shape_cast %171 : vector<16x32xf32> to vector<2x8x32xf32>
    %c0_85 = arith.constant 0 : index
    %c0_86 = arith.constant 0 : index
    %c0_87 = arith.constant 0 : index
    %173 = vector.load %arg19[%c0_85, %c0_86, %c0_87] : memref<2x8x32xf32, #tpu.memory_space<vmem>>, vector<2x8x32xf32>
    tpu.vector_store %arg19[%c0_85, %c0_86, %c0_87], %172 {strides = array<i32>} : memref<2x8x32xf32, #tpu.memory_space<vmem>>, vector<2x8x32xf32>,
    return
  }
  func.func @transform_0(%arg0: i32) -> (i32, i32, i32) {
    %c0_i32 = arith.constant 0 : i32
    %c0_i32_0 = arith.constant 0 : i32
    %c0_i32_1 = arith.constant 0 : i32
    return %arg0, %c0_i32, %c0_i32_0 : i32, i32, i32
  }
  func.func @transform_1(%arg0: i32) -> (i32, i32, i32) {
    %c0_i32 = arith.constant 0 : i32
    %c0_i32_0 = arith.constant 0 : i32
    %c0_i32_1 = arith.constant 0 : i32
    return %arg0, %c0_i32, %c0_i32_0 : i32, i32, i32
  }
  func.func @transform_2(%arg0: i32) -> (i32, i32) {
    %c0_i32 = arith.constant 0 : i32
    %c0_i32_0 = arith.constant 0 : i32
    %c0_i32_1 = arith.constant 0 : i32
    return %c0_i32, %c0_i32_0 : i32, i32
  }
  func.func @transform_3(%arg0: i32) -> (i32, i32) {
    %c0_i32 = arith.constant 0 : i32
    %c0_i32_0 = arith.constant 0 : i32
    %c0_i32_1 = arith.constant 0 : i32
    return %c0_i32, %c0_i32_0 : i32, i32
  }
  func.func @transform_4(%arg0: i32) -> (i32, i32) {
    %c0_i32 = arith.constant 0 : i32
    %c0_i32_0 = arith.constant 0 : i32
    %c0_i32_1 = arith.constant 0 : i32
    return %c0_i32, %c0_i32_0 : i32, i32
  }
  func.func @transform_5(%arg0: i32) -> (i32, i32) {
    %c0_i32 = arith.constant 0 : i32
    %c0_i32_0 = arith.constant 0 : i32
    %c0_i32_1 = arith.constant 0 : i32
    return %c0_i32, %c0_i32_0 : i32, i32
  }
  func.func @transform_6(%arg0: i32) -> (i32, i32) {
    %c0_i32 = arith.constant 0 : i32
    %c0_i32_0 = arith.constant 0 : i32
    %c0_i32_1 = arith.constant 0 : i32
    return %c0_i32, %c0_i32_0 : i32, i32
  }
  func.func @transform_7(%arg0: i32) -> (i32, i32) {
    %c0_i32 = arith.constant 0 : i32
    %c0_i32_0 = arith.constant 0 : i32
    %c0_i32_1 = arith.constant 0 : i32
    return %c0_i32, %c0_i32_0 : i32, i32
  }
  func.func @transform_8(%arg0: i32) -> (i32, i32) {
    %c0_i32 = arith.constant 0 : i32
    %c0_i32_0 = arith.constant 0 : i32
    %c0_i32_1 = arith.constant 0 : i32
    return %c0_i32, %c0_i32_0 : i32, i32
  }
  func.func @transform_9(%arg0: i32) -> (i32, i32) {
    %c0_i32 = arith.constant 0 : i32
    %c0_i32_0 = arith.constant 0 : i32
    %c0_i32_1 = arith.constant 0 : i32
    return %c0_i32, %c0_i32_0 : i32, i32
  }
  func.func @transform_10(%arg0: i32) -> (i32, i32) {
    %c0_i32 = arith.constant 0 : i32
    %c0_i32_0 = arith.constant 0 : i32
    %c0_i32_1 = arith.constant 0 : i32
    return %c0_i32, %c0_i32_0 : i32, i32
  }
  func.func @transform_11(%arg0: i32) -> (i32, i32) {
    %c0_i32 = arith.constant 0 : i32
    %c0_i32_0 = arith.constant 0 : i32
    %c0_i32_1 = arith.constant 0 : i32
    return %c0_i32, %c0_i32_0 : i32, i32
  }
  func.func @transform_12(%arg0: i32) -> (i32, i32) {
    %c0_i32 = arith.constant 0 : i32
    %c0_i32_0 = arith.constant 0 : i32
    %c0_i32_1 = arith.constant 0 : i32
    return %c0_i32, %c0_i32_0 : i32, i32
  }
  func.func @transform_13(%arg0: i32) -> (i32, i32) {
    %c0_i32 = arith.constant 0 : i32
    %c0_i32_0 = arith.constant 0 : i32
    %c0_i32_1 = arith.constant 0 : i32
    return %c0_i32, %c0_i32_0 : i32, i32
  }
  func.func @transform_14(%arg0: i32) -> (i32, i32) {
    %c0_i32 = arith.constant 0 : i32
    %c0_i32_0 = arith.constant 0 : i32
    %c0_i32_1 = arith.constant 0 : i32
    return %c0_i32, %c0_i32_0 : i32, i32
  }
  func.func @transform_15(%arg0: i32) -> (i32, i32) {
    %c0_i32 = arith.constant 0 : i32
    %c0_i32_0 = arith.constant 0 : i32
    %c0_i32_1 = arith.constant 0 : i32
    return %c0_i32, %c0_i32_0 : i32, i32
  }
  func.func @transform_16(%arg0: i32) -> (i32, i32) {
    %c0_i32 = arith.constant 0 : i32
    %c0_i32_0 = arith.constant 0 : i32
    %c0_i32_1 = arith.constant 0 : i32
    return %c0_i32, %c0_i32_0 : i32, i32
  }
  func.func @transform_17(%arg0: i32) -> (i32, i32) {
    %c0_i32 = arith.constant 0 : i32
    %c0_i32_0 = arith.constant 0 : i32
    %c0_i32_1 = arith.constant 0 : i32
    return %c0_i32, %c0_i32_0 : i32, i32
  }
  func.func @transform_18(%arg0: i32) -> (i32, i32, i32) {
    %c0_i32 = arith.constant 0 : i32
    %c0_i32_0 = arith.constant 0 : i32
    %c0_i32_1 = arith.constant 0 : i32
    return %arg0, %c0_i32, %c0_i32_0 : i32, i32, i32
  }
}

</mosaic_0001>

<bundles_post_ra>
// kernel: tpu_custom_call.1
= control target key start
LH: loop header
LB: loop body
LE: loop exit
PB: predicated region body
PF: predicated region fallthrough
CT: control target
= control target key end

     0   :  { %s1764_s0 = inlined_call_operand.vmem [shape: f32[2,8,32], index: 0, kind: input, shape index: {}]   ;;  %s1765_s1 = inlined_call_operand.hbm [shape: bf16[2,8,8], index: 1, kind: input, shape index: {}]   ;;  %s1766_s2 = inlined_call_operand.vmem [shape: f32[1,32], index: 2, kind: input, shape index: {}]   ;;  %s1767_s3 = inlined_call_operand.vmem [shape: f32[1,32], index: 3, kind: input, shape index: {}]   ;;  %s1768_s4 = inlined_call_operand.vmem [shape: bf16[32,32], index: 4, kind: input, shape index: {}]   ;;  %s1769_s5 = inlined_call_operand.vmem [shape: f32[1,32], index: 5, kind: input, shape index: {}]   ;;  %s1770_s6 = inlined_call_operand.vmem [shape: bf16[32,32], index: 6, kind: input, shape index: {}]   ;;  %s1771_s7 = inlined_call_operand.vmem [shape: f32[1,32], index: 7, kind: input, shape index: {}]   ;;  %s1772_s8 = inlined_call_operand.hbm [shape: bf16[32,32], index: 8, kind: input, shape index: {}]   ;;  %s1773_s9 = inlined_call_operand.vmem [shape: f32[1,32], index: 9, kind: input, shape index: {}]   ;;  %s1774_s10 = inlined_call_operand.hbm [shape: bf16[32,32], index: 10, kind: input, shape index: {}]   ;;  %s1775_s11 = inlined_call_operand.vmem [shape: f32[1,32], index: 11, kind: input, shape index: {}]   ;;  %s1776_s12 = inlined_call_operand.vmem [shape: f32[1,32], index: 12, kind: input, shape index: {}]   ;;  %s1777_s13 = inlined_call_operand.vmem [shape: f32[1,32], index: 13, kind: input, shape index: {}]   ;;  %s1778_s14 = inlined_call_operand.hbm [shape: bf16[32,64], index: 14, kind: input, shape index: {}]   ;;  %s1779_s15 = inlined_call_operand.vmem [shape: f32[1,64], index: 15, kind: input, shape index: {}]   ;;  %s1780_s16 = inlined_call_operand.vmem [shape: bf16[64,32], index: 16, kind: input, shape index: {}]   ;;  %s1781_s17 = inlined_call_operand.vmem [shape: f32[1,32], index: 17, kind: input, shape index: {}]   ;;  %s1782_s18 = inlined_call_operand.hbm [shape: f32[2,8,32], index: 18, kind: output, shape index: {}]  }
   0x1   :  { %1784 = sst [smem:[#allocation16_spill]] %s1764_s0 }
   0x2   :  { %1785 = sst [smem:[#allocation17_spill]] %s1765_s1 }
   0x3   :  { %1786 = sst [smem:[#allocation18_spill]] %s1766_s2 }
   0x4   :  { %1787 = sst [smem:[#allocation19_spill]] %s1782_s18 }
   0x5   :  { %23 = vsyncpa [#allocation4], 0 }
   0x6   :  { %24 = vsyncpa [#allocation7], 0 }
   0x7   :  { %25 = vsyncpa [#allocation10], 0 }
   0x8   :  { %26 = vsyncpa [#allocation5], 0  ;;  %s58_s29 = sshll.u32 %s1772_s8, 4  ;;  %s1417_s30 = smov [#allocation6]   ;;  %s59_s29 = int_to_ptr.hbm [resolvable:$true] %s58_s29 }
   0x9   :  { %s60_s0 = sshll.u32 %s1417_s30, 4  ;;  %s1788_s20 = sld [smem:[#allocation17_spill]]  ;;  %s61_s0 = int_to_ptr.vmem [resolvable:$true] %s60_s0 }
   0xa   :  { %s1418_s22 = smov 64   ;;  %s1419_s2 = smov 4  }
   0xb   :  { %66 = dma.hbm_to_vmem [thread:$0]  %s59_s29, 256, %s61_s0, [#allocation7], %s1418_s22, %s1418_s22, %s1419_s2  }
   0xc   :  { %s1420_s23 = smov [#allocation3]   ;;  %s73_s18 = sshll.u32 %s1774_s10, 4  ;;  %s74_s18 = int_to_ptr.hbm [resolvable:$true] %s73_s18 }
   0xd   :  { %s35_s24 = sshll.u32 %s1420_s23, 4  ;;  %s92_s28 = sshll.u32 %s1778_s14, 4  ;;  %s36_s24 = int_to_ptr.vmem [resolvable:$true] %s35_s24  ;;  %s93_s28 = int_to_ptr.hbm [resolvable:$true] %s92_s28 }
   0xe   :  { %s1421_s30 = smov [#allocation8]   ;;  %s1422_s29 = smov [#allocation9]  }
   0xf   :  { %s33_s21 = sshll.u32 %s1788_s20, 4  ;;  %s75_s19 = sshll.u32 %s1421_s30, 4  ;;  %s34_s21 = int_to_ptr.hbm [resolvable:$true] %s33_s21  ;;  %s76_s19 = int_to_ptr.vmem [resolvable:$true] %s75_s19 }
  0x10   :  { %41 = dma.hbm_to_vmem [thread:$0]  %s34_s21, 128, %s36_s24, [#allocation4], %s1418_s22, %s1418_s22, %s1419_s2  }
  0x11   :  { %81 = dma.hbm_to_vmem [thread:$0]  %s74_s18, 256, %s76_s19, [#allocation7], %s1418_s22, %s1418_s22, %s1419_s2  }
  0x12   :  { %s94_s0 = sshll.u32 %s1422_s29, 4  ;;  %s95_s0 = int_to_ptr.vmem [resolvable:$true] %s94_s0 }
  0x13   :  { %100 = dma.hbm_to_vmem [thread:$0]  %s93_s28, 256, %s95_s0, [#allocation10], %s1418_s22, %s1418_s22, %s1419_s2  }
  0x14   :  { %1409 = dma.done.wait [#allocation4], 128  }
  0x15   :  { %1410 = vsyncadd [#allocation4], 4294967168 }
  0x16   :  { %1411 = dma.done.wait [#allocation7], 512  }
  0x17   :  { %1412 = vsyncadd [#allocation7], 4294966784 }
  0x18   :  { %1413 = dma.done.wait [#allocation10], 256  }
  0x19   :  { %1414 = vsyncadd [#allocation10], 4294967040  ;;  %vm128_vm0 = vcmask 261120   ;;  %s1789_s20 = sld [smem:[#allocation16_spill]]  ;;  %v1423_v4 = vmov 32.0   ;;  %v1204_v21 = vld [vmem:[%s1768_s4 + $0x8] sm:$0xff] }
  0x1a   :  { %1247 = vrcp.f32 %v1423_v4  ;;  %v1206_v22 = vld [vmem:[%s1770_s6 + $0x8] sm:$0xff]  ;;  %v1208_v23 = vld [vmem:[#allocation6 + $0x8] sm:$0xff]  ;;  %220 = vmatpush.bf16.msra.mxu0 %v1204_v21  ;;  %v1207_v28 = vld [vmem:[#allocation6] sm:$0xff]  ;;  %s1790_s27 = sld [smem:[#allocation18_spill]]  ;;  %vm312_vm8 = vcmask 64512   ;;  %vm404_vm9 = vcmask 1043456  }
  0x1b   :  { %254 = vmatpush.bf16.msra.mxu1 %v1206_v22  ;;  %v1203_v25 = vld [vmem:[%s1768_s4] sm:$0xff]  ;;  %288 = vmatpush.bf16.msra.mxu2 %v1208_v23  ;;  %s1429_s14 = smov 16   ;;  %s1430_s18 = smov 24  }
  0x1c   :  { %v1205_v26 = vld [vmem:[%s1770_s6] sm:$0xff]  ;;  %s1791_s10 = sld [smem:[#allocation19_spill]] }
  0x1d   :  { %v1238_v51 = vld [vmem:[%s1767_s3] ss:$0 sm:$0xff] }
  0x1e   :  { %221 = vmatpush.bf16.msra.mxu0 %v1203_v25  ;;  %v1239_v56 = vld [vmem:[%s1769_s5] ss:$0 sm:$0xff]  ;;  %s1424_s5 = smov 120  }
  0x1f   :  { %v124_v0 = vld [vmem:[%s1789_s20] sm:$0xff]  ;;  %v125_v2 = vld [vmem:[%s1789_s20 + $0x8] sm:$0xff]  ;;  %255 = vmatpush.bf16.msra.mxu1 %v1205_v26  ;;  %289 = vmatpush.bf16.msra.mxu2 %v1207_v28  ;;  %s1428_s20 = smov 8  }
  0x20   :  { %v129_v1 = vsel %vm128_vm0, %v124_v0, 0.0  ;;  %v132_v3 = vsel %vm128_vm0, %v125_v2, 0.0  ;;  %v1248_v5 = vpop.eup %1247  ;;  %v1237_v46 = vld [vmem:[%s1790_s27] ss:$0 sm:$0xff] }
  0x21   :  { %130 = vadd.xlane.f32.xlu0 %v129_v1  ;;  %v136_v6 = vmul.f32 32.0, %v1248_v5  ;;  %vm140_vm1 = vweird.f32 %v1248_v5  ;;  %v1240_v57 = vld [vmem:[%s1771_s7] ss:$0 sm:$0xff]  ;;  %s1425_s7 = smov 112  }
  0x22   :  { %s1110_s1 = sshll.u32 %s1791_s10, 4  ;;  %s1111_s1 = int_to_ptr.hbm [resolvable:$true] %s1110_s1 }
  0x23   :  { %v137_v7 = vsub.f32 1.0, %v136_v6 }
  0x25   :  { %v138_v8 = vmul.f32 %v1248_v5, %v137_v7 }
  0x27   :  { %v139_v9 = vadd.f32 %v1248_v5, %v138_v8 }
  0x29   :  { %133 = vadd.xlane.f32.xlu0 %v132_v3  ;;  %v1548_v10 = vsel %vm140_vm1, %v1248_v5, %v139_v9 }
  0x94   :  { %v131_v11 = vpop.xlane.xlu0 %130 }
  0x95   :  { %v142_v12 = vmul.f32 %v1548_v10, %v131_v11 }
  0x97   :  { %v144_v13 = vsub.f32 %v124_v0, %v142_v12  ;;  %v1241_v0 = vld [vmem:[%s1773_s9] ss:$0 sm:$0xff]  ;;  %s1426_s9 = smov 104  }
  0x99   :  { %v146_v14 = vmul.f32 %v144_v13, %v144_v13 }
  0x9b   :  { %v148_v15 = vsel %vm128_vm0, %v146_v14, 0.0 }
  0x9c   :  { %149 = vadd.xlane.f32.xlu1 %v148_v15  ;;  %v134_v16 = vpop.xlane.xlu0 %133 }
  0x9d   :  { %v143_v17 = vmul.f32 %v1548_v10, %v134_v16 }
  0x9f   :  { %v145_v18 = vsub.f32 %v125_v2, %v143_v17 }
  0xa1   :  { %v147_v19 = vmul.f32 %v145_v18, %v145_v18 }
  0xa3   :  { %v151_v20 = vsel %vm128_vm0, %v147_v19, 0.0 }
  0xa4   :  { %152 = vadd.xlane.f32.xlu1 %v151_v20 }
 0x10f   :  { %v150_v24 = vpop.xlane.xlu1 %149 }
 0x110   :  { %v154_v27 = vmul.f32 %v150_v24, %v1548_v10 }
 0x112   :  { %v156_v29 = vadd.f32 1e-05, %v154_v27 }
 0x114   :  { %1249 = vrsqrt.f32 %v156_v29  ;;  %vm164_vm3 = vweird.f32 %v156_v29 }
 0x117   :  { %v153_v30 = vpop.xlane.xlu1 %152 }
 0x118   :  { %v155_v31 = vmul.f32 %v153_v30, %v1548_v10 }
 0x11a   :  { %v1250_v32 = vpop.eup %1249  ;;  %v157_v33 = vadd.f32 1e-05, %v155_v31 }
 0x11b   :  { %v159_v34 = vmul.f32 %v1250_v32, %v156_v29  ;;  %vm165_vm2 = vweird.f32 %v1250_v32 }
 0x11c   :  { %1251 = vrsqrt.f32 %v157_v33  ;;  %vm166_vm4 = vmor %vm164_vm3, %vm165_vm2  ;;  %vm174_vm6 = vweird.f32 %v157_v33 }
 0x11d   :  { %v160_v35 = vmul.f32 %v1250_v32, %v159_v34 }
 0x11f   :  { %v161_v36 = vmul.f32 0.5, %v160_v35 }
 0x121   :  { %v162_v37 = vsub.f32 1.5, %v161_v36 }
 0x122   :  { %v1252_v38 = vpop.eup %1251 }
 0x123   :  { %v163_v39 = vmul.f32 %v1250_v32, %v162_v37  ;;  %v169_v40 = vmul.f32 %v1252_v38, %v157_v33  ;;  %vm175_vm5 = vweird.f32 %v1252_v38 }
 0x124   :  { %vm176_vm7 = vmor %vm174_vm6, %vm175_vm5 }
 0x125   :  { %v170_v41 = vmul.f32 %v1252_v38, %v169_v40  ;;  %v167_v42 = vsel %vm166_vm4, %v1250_v32, %v163_v39 }
 0x126   :  { %v178_v45 = vmul.f32 %v167_v42, %v144_v13 }
 0x127   :  { %v171_v43 = vmul.f32 0.5, %v170_v41 }
 0x128   :  { %v183_v50 = vmul.f32 %v1237_v46, %v178_v45 }
 0x129   :  { %v172_v44 = vsub.f32 1.5, %v171_v43 }
 0x12a   :  { %v1574_v53 = vadd.f32 %v1238_v51, %v183_v50 }
 0x12b   :  { %v173_v47 = vmul.f32 %v1252_v38, %v172_v44 }
 0x12d   :  { %v177_v48 = vsel %vm176_vm7, %v1252_v38, %v173_v47  ;;  %v1218_v38 = vld [vmem:[#allocation3] sm:$0xff]  }
 0x12e   :  { %v179_v49 = vmul.f32 %v177_v48, %v145_v18  ;;  %v1219_v40 = vunpack.c.l.bf16 %v1218_v38  ;;  %v1220_v41 = vunpack.c.h.bf16 %v1218_v38 }
 0x130   :  { %v184_v52 = vmul.f32 %v1237_v46, %v179_v49  ;;  %vm308_vm10 = vcmp.gt.f32.partialorder %v1219_v40, 0.5  ;;  %vm309_vm11 = vcmp.gt.f32.partialorder %v1220_v41, 0.5  ;;  %v1427_v46 = vmov 0.0  }
 0x131   :  { %v310_v47 = vsel %vm308_vm10, -10000.0, %v1427_v46  ;;  %v311_v49 = vsel %vm309_vm11, -10000.0, %v1427_v46 }
 0x132   :  { %v1576_v54 = vadd.f32 %v1238_v51, %v184_v52 }
 0x134   :  { %v190_v55 = vpack.c.bf16 %v1576_v54, %v1574_v53 }
 0x136   :  { %1133 = vmatmul.msk.bf16.vlgmr.msra.gmra.mxu0 %vm128_vm0, %v190_v55  ;;  %1142 = vmatmul.msk.bf16.vlgmr.msra.gmra.mxu1 %vm128_vm0, %v190_v55 }
 0x137   :  { %1151 = vmatmul.msk.bf16.vlgmr.msra.gmra.mxu2 %vm128_vm0, %v190_v55 }
 0x1b3   :  { %v223_v58 = vpop.f32.mrf.mxu0  ;;  %v257_v59 = vpop.f32.mrf.mxu1 }
 0x1b4   :  { %v224_v60 = vadd.f32 %v1239_v56, %v223_v58  ;;  %v258_v61 = vadd.f32 %v1240_v57, %v257_v59 }
 0x1b6   :  { %v296_v62 = vmul.f32 0.35355338, %v224_v60  ;;  %v300_v63 = vpack.c.bf16 %v258_v61, %v258_v61 }
 0x1b8   :  { %v298_v1 = vpack.c.bf16 %v296_v62, %v296_v62  ;;  %v448_v2 = vunpack.c.l.b16 %v300_v63  ;;  %v317_v3 = vsel %vm312_vm8, %v300_v63, 0 }
 0x1b9   :  { %326 = vmatpush.bf16.xpose.msra.mxu3 %v317_v3 }
 0x1ba   :  { %v443_v4 = vunpack.c.l.b16 %v298_v1  ;;  %v449_v5 = vpack.c.b16 %v448_v2, %v448_v2  ;;  %v291_v6 = vpop.f32.mrf.mxu2 }
 0x1bb   :  { %v292_v7 = vadd.f32 %v1241_v0, %v291_v6  ;;  %v225_v8 = vpop.f32.mrf.mxu0  ;;  %v259_v9 = vpop.f32.mrf.mxu1 }
 0x1bc   :  { %v226_v11 = vadd.f32 %v1239_v56, %v225_v8  ;;  %v260_v12 = vadd.f32 %v1240_v57, %v259_v9  ;;  %450 = vrot.lane.b32.xlu2 %v449_v5, %s1424_s5  ;;  %v444_v13 = vpack.c.b16 %v443_v4, %v443_v4 }
 0x1bd   :  { %v1594_v14 = vpack.c.bf16 %v292_v7, %v292_v7 }
 0x1be   :  { %v297_v15 = vmul.f32 0.35355338, %v226_v11  ;;  %v301_v16 = vpack.c.bf16 %v260_v12, %v260_v12  ;;  %445 = vrot.lane.b32.xlu0 %v444_v13, %s1424_s5 }
 0x1bf   :  { %v406_v17 = vsel %vm404_vm9, %v1594_v14, 0 }
 0x1c0   :  { %v299_v18 = vpack.c.bf16 %v297_v15, %v297_v15  ;;  %v477_v19 = vunpack.c.l.b16 %v301_v16  ;;  %415 = vmatpush.bf16.msrb.mxu1 %v406_v17  ;;  %1152 = vmatmul.msk.bf16.vlgmr.msra.gmra.mxu3 %vm312_vm8, %v298_v1  ;;  %v336_v20 = vsel %vm312_vm8, %v301_v16, 0 }
 0x1c1   :  { %345 = vmatpush.bf16.xpose.msrb.mxu0 %v336_v20 }
 0x1c2   :  { %v472_v21 = vunpack.c.l.b16 %v299_v18  ;;  %v478_v22 = vpack.c.b16 %v477_v19, %v477_v19  ;;  %v293_v23 = vpop.f32.mrf.mxu2 }
 0x1c3   :  { %v294_v24 = vadd.f32 %v1241_v0, %v293_v23 }
 0x1c4   :  { %479 = vrot.lane.b32.xlu2 %v478_v22, %s1424_s5  ;;  %v473_v25 = vpack.c.b16 %v472_v21, %v472_v21 }
 0x1c5   :  { %v1602_v26 = vpack.c.bf16 %v294_v24, %v294_v24 }
 0x1c6   :  { %474 = vrot.lane.b32.xlu1 %v473_v25, %s1424_s5  ;;  %632 = vrot.lane.b32.xlu0 %v473_v25, %s1425_s7 }
 0x1c7   :  { %v425_v27 = vsel %vm404_vm9, %v1602_v26, 0 }
 0x1c8   :  { %434 = vmatpush.bf16.msrb.mxu2 %v425_v27  ;;  %1153 = vmatmul.msk.bf16.vlgmr.msrb.gmra.mxu0 %vm312_vm8, %v299_v18 }
 0x1cc   :  { %611 = vrot.lane.b32.xlu2 %v449_v5, %s1425_s7 }
 0x1ce   :  { %783 = vrot.lane.b32.xlu1 %v478_v22, %s1426_s9  ;;  %758 = vrot.lane.b32.xlu0 %v444_v13, %s1426_s9 }
 0x1d4   :  { %634 = vrot.lane.b32.xlu2 %v478_v22, %s1425_s7 }
 0x1dc   :  { %609 = vrot.lane.b32.xlu2 %v444_v13, %s1425_s7 }
 0x1e4   :  { %760 = vrot.lane.b32.xlu2 %v449_v5, %s1426_s9 }
 0x1ec   :  { %781 = vrot.lane.b32.xlu2 %v473_v25, %s1426_s9 }
 0x216   :  { %v451_v28 = vpop.permute.xlu2 %450 }
 0x217   :  { %v456_v29 = vsel %vm312_vm8, %v451_v28, 0 }
 0x218   :  { %465 = vmatpush.bf16.xpose.msrb.mxu3 %v456_v29 }
 0x21e   :  { %v480_v30 = vpop.permute.xlu2 %479 }
 0x21f   :  { %v485_v31 = vsel %vm312_vm8, %v480_v30, 0 }
 0x220   :  { %494 = vmatpush.bf16.xpose.msra.mxu0 %v485_v31 }
 0x226   :  { %v612_v32 = vpop.permute.xlu2 %611 }
 0x227   :  { %v617_v33 = vsel %vm312_vm8, %v612_v32, 0 }
 0x228   :  { %626 = vmatpush.bf16.xpose.msra.mxu3 %v617_v33 }
 0x22e   :  { %v635_v34 = vpop.permute.xlu2 %634 }
 0x22f   :  { %v640_v35 = vsel %vm312_vm8, %v635_v34, 0 }
 0x230   :  { %649 = vmatpush.bf16.xpose.msrb.mxu0 %v640_v35  ;;  %v446_v36 = vpop.permute.xlu0 %445  ;;  %v551_v35 = vunpack.c.l.b16 %v1594_v14 }
 0x231   :  { %1156 = vmatmul.msk.bf16.vlgmr.msrb.gmra.mxu3 %vm312_vm8, %v446_v36 }
 0x232   :  { %v1654_v36 = vpack.c.b16 %v551_v35, %v551_v35 }
 0x236   :  { %v610_v37 = vpop.permute.xlu2 %609 }
 0x238   :  { %v475_v39 = vpop.permute.xlu1 %474  ;;  %v633_v52 = vpop.permute.xlu0 %632 }
 0x239   :  { %1157 = vmatmul.msk.bf16.vlgmr.msra.gmra.mxu0 %vm312_vm8, %v475_v39 }
 0x23e   :  { %v761_v42 = vpop.permute.xlu2 %760 }
 0x23f   :  { %v766_v43 = vsel %vm312_vm8, %v761_v42, 0 }
 0x240   :  { %v784_v44 = vpop.permute.xlu1 %783  ;;  %775 = vmatpush.bf16.xpose.msrb.mxu3 %v766_v43  ;;  %v759_v60 = vpop.permute.xlu0 %758 }
 0x241   :  { %v789_v45 = vsel %vm312_vm8, %v784_v44, 0  ;;  %1160 = vmatmul.msk.bf16.vlgmr.msra.gmra.mxu3 %vm312_vm8, %v610_v37 }
 0x242   :  { %798 = vmatpush.bf16.xpose.msra.mxu0 %v789_v45 }
 0x243   :  { %v328_v48 = vpop.f32.mrf.mxu3 }
 0x244   :  { %v329_v50 = vadd.f32 %v328_v48, %v310_v47 }
 0x245   :  { %v347_v51 = vpop.f32.mrf.mxu0 }
 0x246   :  { %v348_v55 = vadd.f32 %v347_v51, %v311_v49  ;;  %v351_v56 = vsel %vm312_vm8, %v329_v50, -inf  ;;  %v782_v61 = vpop.permute.xlu2 %781 }
 0x247   :  { %352 = vmax.xlane.f32.xlu0 %v351_v56 }
 0x248   :  { %v354_v57 = vsel %vm312_vm8, %v348_v55, -inf }
 0x249   :  { %355 = vmax.xlane.f32.xlu1 %v354_v57  ;;  %1161 = vmatmul.msk.bf16.vlgmr.msrb.gmra.mxu0 %vm312_vm8, %v633_v52 }
 0x24b   :  { %v330_v58 = vpop.f32.mrf.mxu3 }
 0x24d   :  { %v349_v59 = vpop.f32.mrf.mxu0 }
 0x251   :  { %1164 = vmatmul.msk.bf16.vlgmr.msrb.gmra.mxu3 %vm312_vm8, %v759_v60  ;;  %v575_v60 = vunpack.c.l.b16 %v1602_v26 }
 0x259   :  { %1165 = vmatmul.msk.bf16.vlgmr.msra.gmra.mxu0 %vm312_vm8, %v782_v61 }
 0x2b4   :  { %v467_v62 = vpop.f32.mrf.mxu3 }
 0x2b5   :  { %v468_v63 = vadd.f32 %v467_v62, %v310_v47 }
 0x2b6   :  { %v496_v0 = vpop.f32.mrf.mxu0 }
 0x2b7   :  { %v497_v1 = vadd.f32 %v496_v0, %v311_v49  ;;  %v500_v2 = vsel %vm312_vm8, %v468_v63, -inf }
 0x2b8   :  { %501 = vmax.xlane.f32.xlu1 %v500_v2 }
 0x2b9   :  { %v503_v3 = vsel %vm312_vm8, %v497_v1, -inf }
 0x2ba   :  { %504 = vmax.xlane.f32.xlu2 %v503_v3  ;;  %v353_v4 = vpop.xlane.xlu0 %352  ;;  %v576_v3 = vpack.c.b16 %v575_v60, %v575_v60 }
 0x2bb   :  { %v357_v5 = vsub.f32 %v329_v50, %v353_v4 }
 0x2bc   :  { %v469_v6 = vpop.f32.mrf.mxu3  ;;  %v356_v8 = vpop.xlane.xlu1 %355 }
 0x2bd   :  { %v359_v7 = vmul.f32 1.442695, %v357_v5  ;;  %v358_v11 = vsub.f32 %v348_v55, %v356_v8 }
 0x2be   :  { %v498_v9 = vpop.f32.mrf.mxu0 }
 0x2bf   :  { %1253 = vpow2.f32 %v359_v7  ;;  %v361_v12 = vmul.f32 1.442695, %v358_v11 }
 0x2c1   :  { %1255 = vpow2.f32 %v361_v12 }
 0x2c4   :  { %v628_v13 = vpop.f32.mrf.mxu3 }
 0x2c5   :  { %v1632_v15 = vpop.eup %1253  ;;  %v1634_v16 = vadd.f32 %v628_v13, %v310_v47 }
 0x2c6   :  { %v651_v17 = vpop.f32.mrf.mxu0  ;;  %v363_v18 = vsel %vm312_vm8, %v1632_v15, 0.0 }
 0x2c7   :  { %v652_v19 = vadd.f32 %v651_v17, %v311_v49  ;;  %364 = vadd.xlane.f32.xlu1 %v363_v18  ;;  %v655_v20 = vsel %vm312_vm8, %v1634_v16, -inf  ;;  %v1641_v23 = vpop.eup %1255 }
 0x2c8   :  { %656 = vmax.xlane.f32.xlu2 %v655_v20  ;;  %v366_v25 = vsel %vm312_vm8, %v1641_v23, 0.0 }
 0x2c9   :  { %v658_v21 = vsel %vm312_vm8, %v652_v19, -inf }
 0x2ca   :  { %659 = vmax.xlane.f32.xlu0 %v658_v21 }
 0x2cc   :  { %v630_v22 = vpop.f32.mrf.mxu3 }
 0x2ce   :  { %v653_v24 = vpop.f32.mrf.mxu0 }
 0x2d2   :  { %367 = vadd.xlane.f32.xlu0 %v366_v25 }
 0x2d4   :  { %v777_v27 = vpop.f32.mrf.mxu3 }
 0x2d5   :  { %v1645_v28 = vadd.f32 %v777_v27, %v310_v47 }
 0x2d6   :  { %v800_v29 = vpop.f32.mrf.mxu0 }
 0x2d7   :  { %v1647_v30 = vadd.f32 %v800_v29, %v311_v49  ;;  %v804_v31 = vsel %vm312_vm8, %v1645_v28, -inf }
 0x2d8   :  { %805 = vmax.xlane.f32.xlu2 %v804_v31 }
 0x2d9   :  { %v807_v32 = vsel %vm312_vm8, %v1647_v30, -inf }
 0x2da   :  { %808 = vmax.xlane.f32.xlu1 %v807_v32 }
 0x2dc   :  { %v779_v33 = vpop.f32.mrf.mxu3 }
 0x2de   :  { %v802_v34 = vpop.f32.mrf.mxu0 }
 0x2f3   :  { %553 = vrot.lane.b32.xlu1 %v1654_v36, %s1424_s5 }
 0x32b   :  { %v502_v37 = vpop.xlane.xlu1 %501 }
 0x32c   :  { %v506_v38 = vsub.f32 %v468_v63, %v502_v37 }
 0x32d   :  { %v505_v39 = vpop.xlane.xlu2 %504 }
 0x32e   :  { %v508_v40 = vmul.f32 1.442695, %v506_v38  ;;  %v507_v41 = vsub.f32 %v497_v1, %v505_v39 }
 0x330   :  { %1257 = vpow2.f32 %v508_v40  ;;  %v510_v42 = vmul.f32 1.442695, %v507_v41 }
 0x332   :  { %1259 = vpow2.f32 %v510_v42 }
 0x336   :  { %v1658_v43 = vpop.eup %1257 }
 0x337   :  { %v512_v44 = vsel %vm312_vm8, %v1658_v43, 0.0 }
 0x338   :  { %v1662_v45 = vpop.eup %1259  ;;  %513 = vadd.xlane.f32.xlu2 %v512_v44 }
 0x339   :  { %v515_v14 = vsel %vm312_vm8, %v1662_v45, 0.0 }
 0x33a   :  { %516 = vadd.xlane.f32.xlu0 %v515_v14  ;;  %v365_v46 = vpop.xlane.xlu1 %364 }
 0x33b   :  { %1261 = vrcp.f32 %v365_v46  ;;  %v380_v55 = vand.u32 2147483648, %v365_v46  ;;  %v378_v58 = vand.u32 2147483647, %v365_v46  ;;  %vm374_vm13 = vweird.f32 %v365_v46 }
 0x33d   :  { %v660_v47 = vpop.xlane.xlu0 %659  ;;  %v381_v62 = vor.u32 1.1754944e-38, %v380_v55  ;;  %vm379_vm15 = vcmp.eq.f32.partialorder %v378_v58, 8.507059e+37 }
 0x33e   :  { %v662_v48 = vsub.f32 %v652_v19, %v660_v47  ;;  %v657_v19 = vpop.xlane.xlu2 %656 }
 0x33f   :  { %v661_v27 = vsub.f32 %v1634_v16, %v657_v19 }
 0x340   :  { %v665_v49 = vmul.f32 1.442695, %v662_v48 }
 0x341   :  { %v1262_v50 = vpop.eup %1261  ;;  %v663_v31 = vmul.f32 1.442695, %v661_v27 }
 0x342   :  { %v370_v51 = vmul.f32 %v1262_v50, %v365_v46  ;;  %1263 = vpow2.f32 %v665_v49  ;;  %vm375_vm12 = vweird.f32 %v1262_v50 }
 0x343   :  { %vm376_vm14 = vmor %vm374_vm13, %vm375_vm12 }
 0x344   :  { %v371_v52 = vsub.f32 1.0, %v370_v51 }
 0x345   :  { %v368_v56 = vpop.xlane.xlu0 %367 }
 0x346   :  { %v372_v57 = vmul.f32 %v1262_v50, %v371_v52  ;;  %1265 = vrcp.f32 %v368_v56  ;;  %v395_v7 = vand.u32 2147483648, %v368_v56  ;;  %v393_v9 = vand.u32 2147483647, %v368_v56 }
 0x347   :  { %vm389_vm2 = vweird.f32 %v368_v56 }
 0x348   :  { %v1666_v59 = vpop.eup %1263  ;;  %v373_v61 = vadd.f32 %v1262_v50, %v372_v57  ;;  %v396_v12 = vor.u32 1.1754944e-38, %v395_v7  ;;  %vm394_vm4 = vcmp.eq.f32.partialorder %v393_v9, 8.507059e+37 }
 0x349   :  { %v670_v63 = vsel %vm312_vm8, %v1666_v59, 0.0 }
 0x34a   :  { %671 = vadd.xlane.f32.xlu1 %v670_v63  ;;  %v377_v0 = vsel %vm376_vm14, %v1262_v50, %v373_v61 }
 0x34b   :  { %v382_v1 = vsel %vm379_vm15, %v381_v62, %v377_v0  ;;  %v806_v21 = vpop.xlane.xlu2 %805 }
 0x34c   :  { %v1266_v2 = vpop.eup %1265  ;;  %v383_v4 = vmul.f32 %v1632_v15, %v382_v1  ;;  %v810_v24 = vsub.f32 %v1645_v28, %v806_v21 }
 0x34d   :  { %v385_v5 = vmul.f32 %v1266_v2, %v368_v56  ;;  %vm390_vm1 = vweird.f32 %v1266_v2  ;;  %v809_v20 = vpop.xlane.xlu1 %808 }
 0x34e   :  { %577 = vrot.lane.b32.xlu0 %v576_v3, %s1424_s5  ;;  %v399_v6 = vpack.c.bf16 %v383_v4, %v383_v4  ;;  %vm391_vm3 = vmor %vm389_vm2, %vm390_vm1  ;;  %v812_v29 = vmul.f32 1.442695, %v810_v24  ;;  %s1432_s5 = smov 128  }
 0x34f   :  { %v386_v26 = vsub.f32 1.0, %v385_v5 }
 0x350   :  { %726 = vrot.lane.b32.xlu2 %v576_v3, %s1425_s7  ;;  %1154 = vmatmul.msk.bf16.vlgmr.msrb.gmra.mxu1 %vm312_vm8, %v399_v6  ;;  %1267 = vpow2.f32 %v812_v29 }
 0x351   :  { %v387_v8 = vmul.f32 %v1266_v2, %v386_v26  ;;  %1269 = vpow2.f32 %v663_v31 }
 0x353   :  { %v388_v11 = vadd.f32 %v1266_v2, %v387_v8 }
 0x355   :  { %v392_v13 = vsel %vm391_vm3, %v1266_v2, %v388_v11 }
 0x356   :  { %v397_v15 = vsel %vm394_vm4, %v396_v12, %v392_v13  ;;  %v1684_v33 = vpop.eup %1267 }
 0x357   :  { %v398_v17 = vmul.f32 %v1641_v23, %v397_v15  ;;  %v811_v23 = vsub.f32 %v1647_v30, %v809_v20  ;;  %v1686_v34 = vpop.eup %1269  ;;  %v816_v28 = vsel %vm312_vm8, %v1684_v33, 0.0 }
 0x358   :  { %v667_v16 = vsel %vm312_vm8, %v1686_v34, 0.0 }
 0x359   :  { %v400_v18 = vpack.c.bf16 %v398_v17, %v398_v17  ;;  %v814_v32 = vmul.f32 1.442695, %v811_v23 }
 0x35b   :  { %1155 = vmatmul.msk.bf16.vlgmr.msrb.gmra.mxu2 %vm312_vm8, %v400_v18  ;;  %1271 = vpow2.f32 %v814_v32 }
 0x361   :  { %v1692_v35 = vpop.eup %1271 }
 0x362   :  { %v819_v37 = vsel %vm312_vm8, %v1692_v35, 0.0 }
 0x363   :  { %705 = vrot.lane.b32.xlu1 %v1654_v36, %s1425_s7 }
 0x365   :  { %v554_v22 = vpop.permute.xlu1 %553 }
 0x366   :  { %v559_v25 = vsel %vm404_vm9, %v554_v22, 0 }
 0x367   :  { %568 = vmatpush.bf16.msra.mxu1 %v559_v25 }
 0x36b   :  { %875 = vrot.lane.b32.xlu1 %v576_v3, %s1426_s9 }
 0x378   :  { %817 = vadd.xlane.f32.xlu0 %v816_v28 }
 0x379   :  { %668 = vadd.xlane.f32.xlu2 %v667_v16 }
 0x381   :  { %820 = vadd.xlane.f32.xlu2 %v819_v37 }
 0x399   :  { %854 = vrot.lane.b32.xlu2 %v1654_v36, %s1426_s9 }
 0x3ab   :  { %v514_v30 = vpop.xlane.xlu2 %513 }
 0x3ac   :  { %1273 = vrcp.f32 %v514_v30  ;;  %v529_v14 = vand.u32 2147483648, %v514_v30  ;;  %v527_v47 = vand.u32 2147483647, %v514_v30  ;;  %vm523_vm6 = vweird.f32 %v514_v30 }
 0x3ad   :  { %v517_v38 = vpop.xlane.xlu0 %516 }
 0x3ae   :  { %1275 = vrcp.f32 %v517_v38  ;;  %v544_v49 = vand.u32 2147483648, %v517_v38  ;;  %v542_v36 = vand.u32 2147483647, %v517_v38  ;;  %v530_v52 = vor.u32 1.1754944e-38, %v529_v14 }
 0x3af   :  { %vm528_vm11 = vcmp.eq.f32.partialorder %v527_v47, 8.507059e+37  ;;  %vm538_vm12 = vweird.f32 %v517_v38 }
 0x3b0   :  { %v545_v58 = vor.u32 1.1754944e-38, %v544_v49  ;;  %vm543_vm14 = vcmp.eq.f32.partialorder %v542_v36, 8.507059e+37 }
 0x3b2   :  { %v1274_v39 = vpop.eup %1273 }
 0x3b3   :  { %v519_v40 = vmul.f32 %v1274_v39, %v514_v30  ;;  %vm524_vm5 = vweird.f32 %v1274_v39  ;;  %v727_v1 = vpop.permute.xlu2 %726 }
 0x3b4   :  { %v1276_v41 = vpop.eup %1275  ;;  %vm525_vm10 = vmor %vm523_vm6, %vm524_vm5  ;;  %v732_v5 = vsel %vm404_vm9, %v727_v1, 0 }
 0x3b5   :  { %v520_v42 = vsub.f32 1.0, %v519_v40  ;;  %v534_v44 = vmul.f32 %v1276_v41, %v517_v38  ;;  %vm539_vm7 = vweird.f32 %v1276_v41 }
 0x3b6   :  { %vm540_vm13 = vmor %vm538_vm12, %vm539_vm7 }
 0x3b7   :  { %v521_v46 = vmul.f32 %v1274_v39, %v520_v42  ;;  %v535_v48 = vsub.f32 1.0, %v534_v44 }
 0x3b9   :  { %v522_v50 = vadd.f32 %v1274_v39, %v521_v46  ;;  %v536_v51 = vmul.f32 %v1276_v41, %v535_v48 }
 0x3bb   :  { %v526_v55 = vsel %vm525_vm10, %v1274_v39, %v522_v50  ;;  %v537_v56 = vadd.f32 %v1276_v41, %v536_v51 }
 0x3bc   :  { %v531_v57 = vsel %vm528_vm11, %v530_v52, %v526_v55 }
 0x3bd   :  { %v532_v60 = vmul.f32 %v1658_v43, %v531_v57  ;;  %v541_v61 = vsel %vm540_vm13, %v1276_v41, %v537_v56  ;;  %v672_v62 = vpop.xlane.xlu1 %671 }
 0x3be   :  { %v546_v63 = vsel %vm543_vm14, %v545_v58, %v541_v61  ;;  %1277 = vrcp.f32 %v672_v62  ;;  %v699_v8 = vand.u32 2147483648, %v672_v62  ;;  %vm693_vm1 = vweird.f32 %v672_v62 }
 0x3bf   :  { %v547_v0 = vmul.f32 %v1662_v45, %v546_v63  ;;  %v548_v2 = vpack.c.bf16 %v532_v60, %v532_v60  ;;  %v697_v45 = vand.u32 2147483647, %v672_v62 }
 0x3c0   :  { %v578_v3 = vpop.permute.xlu0 %577  ;;  %v700_v12 = vor.u32 1.1754944e-38, %v699_v8 }
 0x3c1   :  { %v583_v4 = vsel %vm404_vm9, %v578_v3, 0  ;;  %1158 = vmatmul.msk.bf16.vlgmr.msra.gmra.mxu1 %vm312_vm8, %v548_v2  ;;  %v549_v6 = vpack.c.bf16 %v547_v0, %v547_v0  ;;  %vm698_vm3 = vcmp.eq.f32.partialorder %v697_v45, 8.507059e+37 }
 0x3c2   :  { %592 = vmatpush.bf16.msra.mxu2 %v583_v4 }
 0x3c4   :  { %v1278_v43 = vpop.eup %1277 }
 0x3c5   :  { %v689_v26 = vmul.f32 %v1278_v43, %v672_v62  ;;  %1159 = vmatmul.msk.bf16.vlgmr.msra.gmra.mxu2 %vm312_vm8, %v549_v6  ;;  %vm694_vm15 = vweird.f32 %v1278_v43 }
 0x3c6   :  { %741 = vmatpush.bf16.msrb.mxu2 %v732_v5  ;;  %vm695_vm2 = vmor %vm693_vm1, %vm694_vm15 }
 0x3c7   :  { %v690_v7 = vsub.f32 1.0, %v689_v26 }
 0x3c9   :  { %v691_v9 = vmul.f32 %v1278_v43, %v690_v7 }
 0x3cb   :  { %v692_v11 = vadd.f32 %v1278_v43, %v691_v9 }
 0x3cd   :  { %v696_v13 = vsel %vm695_vm2, %v1278_v43, %v692_v11  ;;  %v417_v15 = vpop.f32.mrf.mxu1  ;;  %vm755_vm2 = vcmask 195712  }
 0x3ce   :  { %v701_v17 = vsel %vm698_vm3, %v700_v12, %v696_v13  ;;  %440 = vst.msk [vmem:[#allocation2] sm:$0xff] %vm312_vm8, %v417_v15  ;;  %vm904_vm3 = vcmask 261312  }
 0x3cf   :  { %v702_v18 = vmul.f32 %v1666_v59, %v701_v17 }
 0x3d1   :  { %v704_v19 = vpack.c.bf16 %v702_v18, %v702_v18 }
 0x3d5   :  { %v419_v20 = vpop.f32.mrf.mxu1  ;;  %v706_v21 = vpop.permute.xlu1 %705  ;;  %1163 = vmatmul.msk.bf16.vlgmr.msrb.gmra.mxu2 %vm312_vm8, %v704_v19 }
 0x3d6   :  { %v711_v22 = vsel %vm404_vm9, %v706_v21, 0 }
 0x3d7   :  { %720 = vmatpush.bf16.msrb.mxu1 %v711_v22  ;;  %v1210_v22 = vld [vmem:[#allocation8 + $0x8] sm:$0xff] }
 0x3d8   :  { %939 = vmatpush.bf16.msra.mxu3 %v1210_v22 }
 0x3dd   :  { %v876_v24 = vpop.permute.xlu1 %875 }
 0x3de   :  { %v881_v25 = vsel %vm404_vm9, %v876_v24, 0  ;;  %v436_v27 = vpop.f32.mrf.mxu2  ;;  %v1209_v24 = vld [vmem:[#allocation8] sm:$0xff] }
 0x3df   :  { %441 = vst.msk [vmem:[#allocation2 + $0x8] sm:$0xff] %vm312_vm8, %v436_v27  ;;  %890 = vmatpush.bf16.msra.mxu2 %v881_v25  ;;  %940 = vmatpush.bf16.msra.mxu3 %v1209_v24 }
 0x3e6   :  { %v438_v29 = vpop.f32.mrf.mxu2 }
 0x3eb   :  { %v818_v31 = vpop.xlane.xlu0 %817 }
 0x3ec   :  { %1279 = vrcp.f32 %v818_v31  ;;  %v669_v23 = vpop.xlane.xlu2 %668  ;;  %v833_v62 = vand.u32 2147483648, %v818_v31  ;;  %v831_v0 = vand.u32 2147483647, %v818_v31 }
 0x3ed   :  { %1281 = vrcp.f32 %v669_v23  ;;  %v684_v38 = vand.u32 2147483648, %v669_v23  ;;  %v682_v40 = vand.u32 2147483647, %v669_v23  ;;  %vm678_vm5 = vweird.f32 %v669_v23 }
 0x3ee   :  { %v834_v4 = vor.u32 1.1754944e-38, %v833_v62  ;;  %vm832_vm1 = vcmp.eq.f32.partialorder %v831_v0, 8.507059e+37 }
 0x3ef   :  { %v685_v14 = vor.u32 1.1754944e-38, %v684_v38  ;;  %vm683_vm7 = vcmp.eq.f32.partialorder %v682_v40, 8.507059e+37 }
 0x3f2   :  { %v1280_v59 = vpop.eup %1279 }
 0x3f3   :  { %v1282_v32 = vpop.eup %1281  ;;  %v823_v37 = vmul.f32 %v1280_v59, %v818_v31  ;;  %vm828_vm11 = vweird.f32 %v1280_v59 }
 0x3f4   :  { %v674_v28 = vmul.f32 %v1282_v32, %v669_v23  ;;  %v821_v16 = vpop.xlane.xlu2 %820  ;;  %vm679_vm4 = vweird.f32 %v1282_v32 }
 0x3f5   :  { %1283 = vrcp.f32 %v821_v16  ;;  %v824_v41 = vsub.f32 1.0, %v823_v37  ;;  %vm680_vm6 = vmor %vm678_vm5, %vm679_vm4  ;;  %v848_v55 = vand.u32 2147483648, %v821_v16  ;;  %v846_v57 = vand.u32 2147483647, %v821_v16 }
 0x3f6   :  { %v675_v30 = vsub.f32 1.0, %v674_v28  ;;  %vm842_vm12 = vweird.f32 %v821_v16 }
 0x3f7   :  { %v825_v51 = vmul.f32 %v1280_v59, %v824_v41  ;;  %v849_v63 = vor.u32 1.1754944e-38, %v848_v55  ;;  %vm847_vm14 = vcmp.eq.f32.partialorder %v846_v57, 8.507059e+37  ;;  %v1216_v57 = vld [vmem:[%s1780_s16 + $0x18] sm:$0xff] }
 0x3f8   :  { %v676_v39 = vmul.f32 %v1282_v32, %v675_v30 }
 0x3f9   :  { %v826_v60 = vadd.f32 %v1280_v59, %v825_v51 }
 0x3fa   :  { %v677_v42 = vadd.f32 %v1282_v32, %v676_v39 }
 0x3fb   :  { %v1284_v44 = vpop.eup %1283 }
 0x3fc   :  { %v681_v46 = vsel %vm680_vm6, %v1282_v32, %v677_v42  ;;  %v838_v47 = vmul.f32 %v1284_v44, %v821_v16  ;;  %v855_v48 = vpop.permute.xlu2 %854  ;;  %vm843_vm10 = vweird.f32 %v1284_v44  ;;  %v1242_v32 = vld [vmem:[%s1775_s11] ss:$0 sm:$0xff] }
 0x3fd   :  { %v686_v49 = vsel %vm683_vm7, %v685_v14, %v681_v46  ;;  %v860_v50 = vsel %vm404_vm9, %v855_v48, 0  ;;  %vm844_vm13 = vmor %vm842_vm12, %vm843_vm10  ;;  %vm827_vm9 = vweird.f32 %v818_v31  ;;  %vm1082_vm12 = vcmask 523264  }
 0x3fe   :  { %v687_v36 = vmul.f32 %v1686_v34, %v686_v49  ;;  %v839_v52 = vsub.f32 1.0, %v838_v47  ;;  %869 = vmatpush.bf16.msra.mxu1 %v860_v50  ;;  %vm829_vm15 = vmor %vm827_vm9, %vm828_vm11 }
 0x3ff   :  { %v830_v2 = vsel %vm829_vm15, %v1280_v59, %v826_v60 }
 0x400   :  { %v840_v56 = vmul.f32 %v1284_v44, %v839_v52  ;;  %v703_v58 = vpack.c.bf16 %v687_v36, %v687_v36  ;;  %v835_v6 = vsel %vm832_vm1, %v834_v4, %v830_v2 }
 0x401   :  { %v836_v43 = vmul.f32 %v1684_v33, %v835_v6 }
 0x402   :  { %v841_v61 = vadd.f32 %v1284_v44, %v840_v56  ;;  %1162 = vmatmul.msk.bf16.vlgmr.msrb.gmra.mxu1 %vm312_vm8, %v703_v58  ;;  %v1211_v56 = vld [vmem:[#allocation9] sm:$0xff] }
 0x403   :  { %v852_v26 = vpack.c.bf16 %v836_v43, %v836_v43  ;;  %1090 = vmatpush.bf16.msrb.mxu1 %v1216_v57 }
 0x404   :  { %v845_v1 = vsel %vm844_vm13, %v1284_v44, %v841_v61 }
 0x405   :  { %v850_v34 = vsel %vm847_vm14, %v849_v63, %v845_v1 }
 0x406   :  { %v851_v3 = vmul.f32 %v1692_v35, %v850_v34 }
 0x408   :  { %v853_v5 = vpack.c.bf16 %v851_v3, %v851_v3 }
 0x40a   :  { %1167 = vmatmul.msk.bf16.vlgmr.msra.gmra.mxu2 %vm312_vm8, %v853_v5 }
 0x412   :  { %1166 = vmatmul.msk.bf16.vlgmr.msra.gmra.mxu1 %vm312_vm8, %v852_v26  ;;  %vm606_vm8 = vcmask 130112  }
 0x43e   :  { %v570_v7 = vpop.f32.mrf.mxu1 }
 0x43f   :  { %600 = vrot.lane.b32.xlu1 %v570_v7, %s1428_s20 }
 0x446   :  { %v572_v8 = vpop.f32.mrf.mxu1 }
 0x448   :  { %v594_v9 = vpop.f32.mrf.mxu2 }
 0x449   :  { %602 = vrot.lane.b32.xlu2 %v594_v9, %s1428_s20 }
 0x450   :  { %v596_v35 = vpop.f32.mrf.mxu2 }
 0x451   :  { %v1244_v35 = vld [vmem:[%s1777_s13] ss:$0 sm:$0xff] }
 0x458   :  { %v743_v45 = vpop.f32.mrf.mxu2 }
 0x459   :  { %751 = vrot.lane.b32.xlu2 %v743_v45, %s1429_s14 }
 0x460   :  { %v745_v11 = vpop.f32.mrf.mxu2 }
 0x47f   :  { %v722_v12 = vpop.f32.mrf.mxu1 }
 0x480   :  { %749 = vrot.lane.b32.xlu1 %v722_v12, %s1429_s14 }
 0x487   :  { %v724_v13 = vpop.f32.mrf.mxu1 }
 0x48d   :  { %v892_v33 = vpop.f32.mrf.mxu2 }
 0x48e   :  { %900 = vrot.lane.b32.xlu1 %v892_v33, %s1430_s18 }
 0x48f   :  { %v871_v15 = vpop.f32.mrf.mxu1 }
 0x490   :  { %898 = vrot.lane.b32.xlu0 %v871_v15, %s1430_s18 }
 0x495   :  { %v894_v17 = vpop.f32.mrf.mxu2 }
 0x496   :  { %v1215_v17 = vld [vmem:[%s1780_s16 + $0x10] sm:$0xff] }
 0x497   :  { %v873_v18 = vpop.f32.mrf.mxu1  ;;  %1091 = vmatpush.bf16.msrb.mxu1 %v1215_v17 }
 0x498   :  { %v1214_v18 = vld [vmem:[%s1780_s16 + $0x8] sm:$0xff] }
 0x49b   :  { %1092 = vmatpush.bf16.msrb.mxu1 %v1214_v18 }
 0x4a3   :  { %v603_v19 = vpop.permute.xlu2 %602 }
 0x4a4   :  { %608 = vst.msk [vmem:[#allocation2 + $0x8] sm:$0xff] %vm606_vm8, %v603_v19  ;;  %v1213_v19 = vld [vmem:[%s1780_s16] sm:$0xff]  ;;  %s1431_s16 = smov [#allocation11]  }
 0x4a5   :  { %1093 = vmatpush.bf16.msrb.mxu1 %v1213_v19  ;;  %s1108_s0 = sshll.u32 %s1431_s16, 4  ;;  %s1109_s0 = int_to_ptr.vmem [resolvable:$true] %s1108_s0 }
 0x4b1   :  { %v601_v20 = vpop.permute.xlu1 %600 }
 0x4b2   :  { %607 = vst.msk [vmem:[#allocation2] sm:$0xff] %vm606_vm8, %v601_v20 }
 0x4b3   :  { %v752_v21 = vpop.permute.xlu2 %751 }
 0x4b4   :  { %757 = vst.msk [vmem:[#allocation2 + $0x8] sm:$0xff] %vm755_vm2, %v752_v21  ;;  %v1245_v21 = vld [vmem:[%s1779_s15] ss:$0 sm:$0xff] }
 0x4f2   :  { %v750_v25 = vpop.permute.xlu1 %749 }
 0x4f3   :  { %756 = vst.msk [vmem:[#allocation2] sm:$0xff] %vm755_vm2, %v750_v25 }
 0x500   :  { %v901_v27 = vpop.permute.xlu1 %900 }
 0x501   :  { %906 = vst.msk [vmem:[#allocation2 + $0x8] sm:$0xff] %vm904_vm3, %v901_v27 }
 0x502   :  { %v899_v29 = vpop.permute.xlu0 %898 }
 0x503   :  { %905 = vst.msk [vmem:[#allocation2] sm:$0xff] %vm904_vm3, %v899_v29 }
 0x508   :  { %v908_v23 = vld [vmem:[#allocation2 + $0x8] sm:$0xff] }
 0x50a   :  { %v907_v31 = vld [vmem:[#allocation2] sm:$0xff] }
 0x50b   :  { %v909_v59 = vpack.c.bf16 %v908_v23, %v907_v31  ;;  %v1246_v23 = vld [vmem:[%s1781_s17] ss:$0 sm:$0xff] }
 0x50d   :  { %1176 = vmatmul.msk.bf16.vlgmr.msra.gmra.mxu3 %vm128_vm0, %v909_v59 }
 0x590   :  { %v942_v28 = vpop.f32.mrf.mxu3 }
 0x591   :  { %v943_v16 = vadd.f32 %v1242_v32, %v942_v28 }
 0x593   :  { %v947_v37 = vadd.f32 %v943_v16, %v1574_v53 }
 0x595   :  { %v951_v30 = vsel %vm128_vm0, %v947_v37, 0.0 }
 0x596   :  { %952 = vadd.xlane.f32.xlu2 %v951_v30 }
 0x598   :  { %v944_v38 = vpop.f32.mrf.mxu3 }
 0x599   :  { %v945_v39 = vadd.f32 %v1242_v32, %v944_v38 }
 0x59b   :  { %v948_v40 = vadd.f32 %v945_v39, %v1576_v54  ;;  %v1212_v54 = vld [vmem:[#allocation9 + $0x8] sm:$0xff] }
 0x59c   :  { %1035 = vmatpush.bf16.msrb.mxu0 %v1212_v54 }
 0x59d   :  { %v954_v41 = vsel %vm128_vm0, %v948_v40, 0.0 }
 0x59e   :  { %955 = vadd.xlane.f32.xlu1 %v954_v41 }
 0x5a0   :  { %1036 = vmatpush.bf16.msrb.mxu0 %v1211_v56 }
 0x609   :  { %v953_v42 = vpop.xlane.xlu2 %952 }
 0x60a   :  { %v957_v44 = vmul.f32 %v953_v42, %v1548_v10 }
 0x60c   :  { %v959_v14 = vsub.f32 %v947_v37, %v957_v44 }
 0x60e   :  { %v961_v46 = vmul.f32 %v959_v14, %v959_v14 }
 0x610   :  { %v963_v47 = vsel %vm128_vm0, %v961_v46, 0.0 }
 0x611   :  { %v956_v48 = vpop.xlane.xlu1 %955  ;;  %964 = vadd.xlane.f32.xlu0 %v963_v47 }
 0x612   :  { %v958_v53 = vmul.f32 %v956_v48, %v1548_v10 }
 0x614   :  { %v960_v49 = vsub.f32 %v948_v40, %v958_v53 }
 0x616   :  { %v962_v50 = vmul.f32 %v960_v49, %v960_v49 }
 0x618   :  { %v966_v51 = vsel %vm128_vm0, %v962_v50, 0.0 }
 0x619   :  { %967 = vadd.xlane.f32.xlu2 %v966_v51 }
 0x684   :  { %v965_v36 = vpop.xlane.xlu0 %964 }
 0x685   :  { %v969_v52 = vmul.f32 %v965_v36, %v1548_v10 }
 0x687   :  { %v971_v55 = vadd.f32 1e-05, %v969_v52 }
 0x689   :  { %1285 = vrsqrt.f32 %v971_v55  ;;  %vm979_vm5 = vweird.f32 %v971_v55 }
 0x68c   :  { %v968_v58 = vpop.xlane.xlu2 %967 }
 0x68d   :  { %v970_v60 = vmul.f32 %v968_v58, %v1548_v10  ;;  %v1243_v10 = vld [vmem:[%s1776_s12] ss:$0 sm:$0xff] }
 0x68f   :  { %v1286_v61 = vpop.eup %1285  ;;  %v972_v62 = vadd.f32 1e-05, %v970_v60 }
 0x690   :  { %v974_v63 = vmul.f32 %v1286_v61, %v971_v55  ;;  %vm980_vm4 = vweird.f32 %v1286_v61 }
 0x691   :  { %1287 = vrsqrt.f32 %v972_v62  ;;  %vm981_vm6 = vmor %vm979_vm5, %vm980_vm4  ;;  %vm989_vm10 = vweird.f32 %v972_v62 }
 0x692   :  { %v975_v0 = vmul.f32 %v1286_v61, %v974_v63 }
 0x694   :  { %v976_v1 = vmul.f32 0.5, %v975_v0 }
 0x696   :  { %v977_v34 = vsub.f32 1.5, %v976_v1 }
 0x697   :  { %v1288_v2 = vpop.eup %1287 }
 0x698   :  { %v978_v3 = vmul.f32 %v1286_v61, %v977_v34  ;;  %v984_v4 = vmul.f32 %v1288_v2, %v972_v62  ;;  %vm990_vm7 = vweird.f32 %v1288_v2 }
 0x699   :  { %vm991_vm11 = vmor %vm989_vm10, %vm990_vm7 }
 0x69a   :  { %v985_v5 = vmul.f32 %v1288_v2, %v984_v4  ;;  %v982_v6 = vsel %vm981_vm6, %v1286_v61, %v978_v3 }
 0x69b   :  { %v993_v7 = vmul.f32 %v982_v6, %v959_v14 }
 0x69c   :  { %v986_v43 = vmul.f32 0.5, %v985_v5 }
 0x69d   :  { %v998_v45 = vmul.f32 %v1243_v10, %v993_v7 }
 0x69e   :  { %v987_v26 = vsub.f32 1.5, %v986_v43 }
 0x69f   :  { %v1003_v13 = vadd.f32 %v1244_v35, %v998_v45 }
 0x6a0   :  { %v988_v8 = vmul.f32 %v1288_v2, %v987_v26 }
 0x6a2   :  { %v992_v9 = vsel %vm991_vm11, %v1288_v2, %v988_v8 }
 0x6a3   :  { %v994_v11 = vmul.f32 %v992_v9, %v960_v49 }
 0x6a5   :  { %v999_v12 = vmul.f32 %v1243_v10, %v994_v11 }
 0x6a7   :  { %v1004_v33 = vadd.f32 %v1244_v35, %v999_v12 }
 0x6a9   :  { %v1005_v15 = vpack.c.bf16 %v1004_v33, %v1003_v13 }
 0x6ab   :  { %1185 = vmatmul.msk.bf16.vlgmr.msrb.gmra.mxu0 %vm128_vm0, %v1005_v15 }
 0x728   :  { %v1038_v20 = vpop.f32.mrf.mxu0 }
 0x729   :  { %v1039_v22 = vadd.f32 %v1245_v21, %v1038_v20 }
 0x72b   :  { %v1043_v27 = vmax.f32 %v1039_v22, 0.0 }
 0x730   :  { %v1040_v24 = vpop.f32.mrf.mxu0 }
 0x731   :  { %v1041_v25 = vadd.f32 %v1245_v21, %v1040_v24 }
 0x733   :  { %v1044_v29 = vmax.f32 %v1041_v25, 0.0 }
 0x735   :  { %v1045_v31 = vpack.c.bf16 %v1044_v29, %v1043_v27 }
 0x737   :  { %1202 = vmatmul.msk.bf16.vlgmr.msrb.gmra.mxu1 %vm1082_vm12, %v1045_v31 }
 0x7b4   :  { %v1095_v59 = vpop.f32.mrf.mxu1 }
 0x7b5   :  { %v1096_v32 = vadd.f32 %v1246_v23, %v1095_v59 }
 0x7b7   :  { %v1100_v28 = vadd.f32 %v1096_v32, %v1003_v13 }
 0x7b9   :  { %1102 = vst.msk [vmem:[#allocation11] sm:$0xff] %vm128_vm0, %v1100_v28 }
 0x7bc   :  { %v1097_v16 = vpop.f32.mrf.mxu1 }
 0x7bd   :  { %v1098_v37 = vadd.f32 %v1246_v23, %v1097_v16 }
 0x7bf   :  { %v1101_v30 = vadd.f32 %v1098_v37, %v1004_v33 }
 0x7c1   :  { %1103 = vst.msk [vmem:[#allocation11 + $0x8] sm:$0xff] %vm128_vm0, %v1101_v30 }
 0x7c2   :  { %1116 = dma.vmem_to_hbm [thread:$0]  %s1109_s0, 256, %s1111_s1, [#allocation5], %s1432_s5, %s1432_s5, %s1428_s20  }
 0x7c3   :  { %1415 = dma.done.wait [#allocation5], 256  }
 0x7c4   :  { %1416 = vsyncadd [#allocation5], 4294967040 }
 0x7c5   :  { %1121 = vsyncpa [#allocation4], 1 }
 0x7c6   :  { %1122 = vsyncpa [#allocation7], 1 }
 0x7c7   :  { %1123 = vsyncpa [#allocation10], 1 }
 0x7c8   :  { %1124 = vsyncpa [#allocation5], 1 }

</bundles_post_ra>
